<compile_context>
chip_gen: v7x
topology: tpu7x:2x2x1
jax: 0.10.0
libtpu: 0.0.40
codegen_flags: <defaults>
</compile_context>

<pallas_src>
import jax
import jax.numpy as jnp
from jax import lax
from jax.experimental import pallas as pl
from jax.experimental.pallas import tpu as pltpu


def _lstm_reg_kernel(x_ref,        # (S, B, I)   full sequence in VMEM
                     w0_ref,       # (I+H, 4H)   [W_ih_l0^T ; W_hh_l0^T]
                     b0_ref,       # (1, 4H)     b_ih_l0 + b_hh_l0
                     w1_ref,       # (2H, 4H)    [W_ih_l1^T ; W_hh_l1^T]
                     b1_ref,       # (1, 4H)     b_ih_l1 + b_hh_l1
                     wreg_ref,     # (O, H)      Linear weight (PyTorch layout)
                     breg_ref,     # (1, O)      Linear bias
                     y_ref,        # (S, B, O)   output
                     hall_ref):    # (S, B, H)   VMEM scratch: layer-1 hidden per step
    S, B, _ = x_ref.shape
    H = hall_ref.shape[2]
    G = 4 * H

    # Loop-invariant loads / broadcasts hoisted out of the recurrence.
    w0 = w0_ref[...]
    w1 = w1_ref[...]
    b0 = jnp.broadcast_to(b0_ref[...], (B, G))
    b1 = jnp.broadcast_to(b1_ref[...], (B, G))

    def gate_act(gates):
        # Two full-width transcendentals over the whole (B, 4H) gate vector,
        # then static lane slices (PyTorch gate order i, f, g, o).
        sg = jax.nn.sigmoid(gates)
        tg = jnp.tanh(gates)
        i = sg[:, 0:H]
        f = sg[:, H:2 * H]
        g = tg[:, 2 * H:3 * H]
        o = sg[:, 3 * H:4 * H]
        return i, f, g, o

    def step(t, carry):
        h0, c0, h1, c1 = carry

        x_t = x_ref[t]                                     # (B, I)

        # Layer 0: one fused matmul on concat([x_t, h0]).
        xh0 = jnp.concatenate([x_t, h0], axis=1)           # (B, I+H)
        gates0 = jnp.dot(xh0, w0, preferred_element_type=jnp.float32) + b0
        i0, f0, g0, o0 = gate_act(gates0)
        c0n = f0 * c0 + i0 * g0
        h0n = o0 * jnp.tanh(c0n)

        # Layer 1: one fused matmul on concat([h0_new, h1]).
        xh1 = jnp.concatenate([h0n, h1], axis=1)           # (B, 2H)
        gates1 = jnp.dot(xh1, w1, preferred_element_type=jnp.float32) + b1
        i1, f1, g1, o1 = gate_act(gates1)
        c1n = f1 * c1 + i1 * g1
        h1n = o1 * jnp.tanh(c1n)

        hall_ref[t] = h1n                                  # stash for the head
        return (h0n, c0n, h1n, c1n)

    z = jnp.zeros((B, H), jnp.float32)
    lax.fori_loop(0, S, step, (z, z, z, z), unroll=(S <= 16))

    # Regression head, once, off the recurrent path:
    #   y = sigmoid(h_all @ W_reg^T + b_reg)
    # Implemented as broadcast-multiply + lane reduction (O is tiny, typically 1).
    h_all = hall_ref[...]                                  # (S, B, H)
    wreg = wreg_ref[...]                                   # (O, H)
    breg = breg_ref[...]                                   # (1, O)
    O = wreg.shape[0]

    cols = []
    for o in range(O):                                     # trace-time loop; O small
        wo = wreg[o:o + 1, :][None, :, :]                  # (1, 1, H)
        cols.append(jnp.sum(h_all * wo, axis=-1, keepdims=True))   # (S, B, 1)
    logits = cols[0] if O == 1 else jnp.concatenate(cols, axis=-1)  # (S, B, O)

    y_ref[...] = jax.nn.sigmoid(logits + breg[None]).astype(y_ref.dtype)


def lstm_reg_pallas(x, params):
    """x: (S, B, I) float32 -> (S, B, O) float32."""
    S, B, I = x.shape
    w0, b0, w1, b1, wreg, breg = params
    H = w1.shape[0] // 2
    O = wreg.shape[0]

    # Pad batch to a multiple of 8 (f32 sublane count); padded rows are discarded.
    Bp = max(8, ((B + 7) // 8) * 8)
    if Bp != B:
        x = jnp.pad(x, ((0, 0), (0, Bp - B), (0, 0)))

    y_pad = pl.pallas_call(
        _lstm_reg_kernel,
        out_shape=jax.ShapeDtypeStruct((S, Bp, O), jnp.float32),
        grid=(1,),
        in_specs=[
            pl.BlockSpec((S, Bp, I), lambda i: (0, 0, 0)),       # x (full sequence)
            pl.BlockSpec((I + H, 4 * H), lambda i: (0, 0)),      # fused W layer 0
            pl.BlockSpec((1, 4 * H), lambda i: (0, 0)),          # fused bias layer 0
            pl.BlockSpec((2 * H, 4 * H), lambda i: (0, 0)),      # fused W layer 1
            pl.BlockSpec((1, 4 * H), lambda i: (0, 0)),          # fused bias layer 1
            pl.BlockSpec((O, H), lambda i: (0, 0)),              # W_reg
            pl.BlockSpec((1, O), lambda i: (0, 0)),              # b_reg
        ],
        out_specs=pl.BlockSpec((S, Bp, O), lambda i: (0, 0, 0)),
        scratch_shapes=[
            pltpu.VMEM((S, Bp, H), jnp.float32),                 # per-step layer-1 h
        ],
        compiler_params=pltpu.CompilerParams(
            dimension_semantics=("arbitrary",)),
    )(x, w0, b0, w1, b1, wreg, breg)

    return y_pad[:, :B, :]


def init_params(key, input_size, hidden_size, output_size=1):
    """Deterministic init mirroring PyTorch's U(-1/sqrt(H), 1/sqrt(H)) scheme,
    with weights pre-fused/transposed for the kernel."""
    H, I, O = hidden_size, input_size, output_size
    bound = 1.0 / jnp.sqrt(jnp.float32(H))
    keys = jax.random.split(key, 10)

    def u(k, shape):
        return jax.random.uniform(k, shape, jnp.float32, -bound, bound)

    # Layer 0
    w_ih0 = u(keys[0], (4 * H, I))
    w_hh0 = u(keys[1], (4 * H, H))
    b_ih0 = u(keys[2], (4 * H,))
    b_hh0 = u(keys[3], (4 * H,))
    # Layer 1
    w_ih1 = u(keys[4], (4 * H, H))
    w_hh1 = u(keys[5], (4 * H, H))
    b_ih1 = u(keys[6], (4 * H,))
    b_hh1 = u(keys[7], (4 * H,))
    # Linear head
    w_reg = u(keys[8], (O, H))
    b_reg = u(keys[9], (O,))

    # Fuse: one (I+H, 4H) / (2H, 4H) matrix per layer, summed biases.
    w0 = jnp.concatenate([w_ih0.T, w_hh0.T], axis=0)        # (I+H, 4H)
    w1 = jnp.concatenate([w_ih1.T, w_hh1.T], axis=0)        # (2H, 4H)
    params = (
        w0, (b_ih0 + b_hh0).reshape(1, 4 * H),
        w1, (b_ih1 + b_hh1).reshape(1, 4 * H),
        w_reg, b_reg.reshape(1, O),
    )
    return params


def lstm_reg_reference(x, params):
    """Pure-JAX reference (lax.scan) for correctness checking."""
    w0, b0, w1, b1, wreg, breg = params
    S, B, I = x.shape
    H = w1.shape[0] // 2

    def cell(xh, c, w, b):
        gates = xh @ w + b
        i = jax.nn.sigmoid(gates[:, 0:H])
        f = jax.nn.sigmoid(gates[:, H:2 * H])
        g = jnp.tanh(gates[:, 2 * H:3 * H])
        o = jax.nn.sigmoid(gates[:, 3 * H:4 * H])
        c_new = f * c + i * g
        return o * jnp.tanh(c_new), c_new

    def step(carry, x_t):
        h0, c0, h1, c1 = carry
        h0, c0 = cell(jnp.concatenate([x_t, h0], axis=1), c0, w0, b0)
        h1, c1 = cell(jnp.concatenate([h0, h1], axis=1), c1, w1, b1)
        y_t = jax.nn.sigmoid(h1 @ wreg.T + breg)
        return (h0, c0, h1, c1), y_t

    z = jnp.zeros((B, H), jnp.float32)
    _, ys = lax.scan(step, (z, z, z, z), x)
    return ys


if __name__ == "__main__":
    # Small shapes implied by the forward: x is (seq, batch, input_size).
    SEQ, BATCH, INPUT_SIZE, HIDDEN_SIZE, OUTPUT_SIZE = 8, 2, 4, 32, 1

    key = jax.random.PRNGKey(0)
    k_x, k_p = jax.random.split(key)
    x = jax.random.normal(k_x, (SEQ, BATCH, INPUT_SIZE), dtype=jnp.float32)
    params = init_params(k_p, INPUT_SIZE, HIDDEN_SIZE, OUTPUT_SIZE)

    y = lstm_reg_pallas(x, params)
    y = jax.block_until_ready(y)

    y_ref = jax.block_until_ready(lstm_reg_reference(x, params))
    assert y.shape == (SEQ, BATCH, OUTPUT_SIZE), y.shape
    assert jnp.allclose(y, y_ref, atol=1e-5, rtol=1e-5), float(
        jnp.max(jnp.abs(y - y_ref)))

    print("KERNEL_OK")
</pallas_src>

<mosaic_0001>
module attributes {stable_mosaic.version = 11 : i64} {
  func.func @_lstm_reg_kernel(%arg0: i32, %arg1: memref<8x8x4xf32, #tpu.memory_space<vmem>>, %arg2: memref<36x128xf32, #tpu.memory_space<vmem>>, %arg3: memref<1x128xf32, #tpu.memory_space<vmem>>, %arg4: memref<64x128xf32, #tpu.memory_space<vmem>>, %arg5: memref<1x128xf32, #tpu.memory_space<vmem>>, %arg6: memref<1x32xf32, #tpu.memory_space<vmem>>, %arg7: memref<1x1xf32, #tpu.memory_space<vmem>>, %arg8: memref<8x8x1xf32, #tpu.memory_space<vmem>>, %arg9: memref<8x8x32xf32, #tpu.memory_space<vmem>>) attributes {dimension_semantics = [#tpu.dimension_semantics<arbitrary>], iteration_bounds = array<i64: 1>, scalar_prefetch = 0 : i64, scratch_operands = 1 : i64, tpu.core_type = #tpu.core_type<tc>, window_params = [{pipeline_mode = #tpu.pipeline_mode<synchronous>, transform_indices = @transform_0, window_bounds = array<i64: 8, 8, 4>}, {pipeline_mode = #tpu.pipeline_mode<synchronous>, transform_indices = @transform_1, window_bounds = array<i64: 36, 128>}, {pipeline_mode = #tpu.pipeline_mode<synchronous>, transform_indices = @transform_2, window_bounds = array<i64: 1, 128>}, {pipeline_mode = #tpu.pipeline_mode<synchronous>, transform_indices = @transform_3, window_bounds = array<i64: 64, 128>}, {pipeline_mode = #tpu.pipeline_mode<synchronous>, transform_indices = @transform_4, window_bounds = array<i64: 1, 128>}, {pipeline_mode = #tpu.pipeline_mode<synchronous>, transform_indices = @transform_5, window_bounds = array<i64: 1, 32>}, {pipeline_mode = #tpu.pipeline_mode<synchronous>, transform_indices = @transform_6, window_bounds = array<i64: 1, 1>}, {pipeline_mode = #tpu.pipeline_mode<synchronous>, transform_indices = @transform_7, window_bounds = array<i64: 8, 8, 1>}]} {
    %c0 = arith.constant 0 : index
    %c0_0 = arith.constant 0 : index
    %0 = vector.load %arg2[%c0, %c0_0] : memref<36x128xf32, #tpu.memory_space<vmem>>, vector<36x128xf32>
    %c0_1 = arith.constant 0 : index
    %c0_2 = arith.constant 0 : index
    %1 = vector.load %arg4[%c0_1, %c0_2] : memref<64x128xf32, #tpu.memory_space<vmem>>, vector<64x128xf32>
    %c0_3 = arith.constant 0 : index
    %c0_4 = arith.constant 0 : index
    %2 = vector.load %arg3[%c0_3, %c0_4] : memref<1x128xf32, #tpu.memory_space<vmem>>, vector<1x128xf32>
    %3 = vector.shape_cast %2 : vector<1x128xf32> to vector<1x128xf32>
    %4 = vector.broadcast %3 : vector<1x128xf32> to vector<8x128xf32>
    %c0_5 = arith.constant 0 : index
    %c0_6 = arith.constant 0 : index
    %5 = vector.load %arg5[%c0_5, %c0_6] : memref<1x128xf32, #tpu.memory_space<vmem>>, vector<1x128xf32>
    %6 = vector.shape_cast %5 : vector<1x128xf32> to vector<1x128xf32>
    %7 = vector.broadcast %6 : vector<1x128xf32> to vector<8x128xf32>
    %cst = arith.constant 0.000000e+00 : f32
    %8 = vector.broadcast %cst : f32 to vector<8x32xf32>
    %c0_i32 = arith.constant 0 : i32
    %9 = arith.index_cast %c0_i32 : i32 to index
    %c0_7 = arith.constant 0 : index
    %c0_8 = arith.constant 0 : index
    %10 = vector.load %arg1[%9, %c0_7, %c0_8] : memref<8x8x4xf32, #tpu.memory_space<vmem>>, vector<1x8x4xf32>
    %11 = vector.shape_cast %10 : vector<1x8x4xf32> to vector<8x4xf32>
    %12 = tpu.concatenate %11, %8 in 1 : vector<8x4xf32>, vector<8x32xf32> -> vector<8x36xf32>
    %cst_9 = arith.constant dense<0.000000e+00> : vector<8x128xf32>
    %13 = tpu.matmul %12, %0, %cst_9 {dimension_numbers = #tpu.dot_dimension_numbers<[1], [0], [0], [1], [0, 0, 1, 1], [], []>} : vector<8x36xf32>, vector<36x128xf32>, vector<8x128xf32> -> vector<8x128xf32>
    %14 = arith.addf %13, %4 : vector<8x128xf32>
    %15 = arith.negf %14 : vector<8x128xf32>
    %16 = math.exp %15 : vector<8x128xf32>
    %cst_10 = arith.constant 1.000000e+00 : f32
    %17 = vector.broadcast %cst_10 : f32 to vector<8x128xf32>
    %18 = arith.addf %17, %16 : vector<8x128xf32>
    %19 = arith.divf %17, %18 : vector<8x128xf32>
    %20 = math.tanh %14 : vector<8x128xf32>
    %21 = vector.extract_strided_slice %19 {offsets = [0, 0], sizes = [8, 32], strides = [1, 1]} : vector<8x128xf32> to vector<8x32xf32>
    %22 = vector.extract_strided_slice %19 {offsets = [0, 32], sizes = [8, 32], strides = [1, 1]} : vector<8x128xf32> to vector<8x32xf32>
    %23 = vector.extract_strided_slice %20 {offsets = [0, 64], sizes = [8, 32], strides = [1, 1]} : vector<8x128xf32> to vector<8x32xf32>
    %24 = vector.extract_strided_slice %19 {offsets = [0, 96], sizes = [8, 32], strides = [1, 1]} : vector<8x128xf32> to vector<8x32xf32>
    %25 = arith.mulf %22, %8 : vector<8x32xf32>
    %26 = arith.mulf %21, %23 : vector<8x32xf32>
    %27 = arith.addf %25, %26 : vector<8x32xf32>
    %28 = math.tanh %27 : vector<8x32xf32>
    %29 = arith.mulf %24, %28 : vector<8x32xf32>
    %30 = tpu.concatenate %29, %8 in 1 : vector<8x32xf32>, vector<8x32xf32> -> vector<8x64xf32>
    %cst_11 = arith.constant dense<0.000000e+00> : vector<8x128xf32>
    %31 = tpu.matmul %30, %1, %cst_11 {dimension_numbers = #tpu.dot_dimension_numbers<[1], [0], [0], [1], [0, 0, 1, 1], [], []>} : vector<8x64xf32>, vector<64x128xf32>, vector<8x128xf32> -> vector<8x128xf32>
    %32 = arith.addf %31, %7 : vector<8x128xf32>
    %33 = arith.negf %32 : vector<8x128xf32>
    %34 = math.exp %33 : vector<8x128xf32>
    %cst_12 = arith.constant 1.000000e+00 : f32
    %35 = vector.broadcast %cst_12 : f32 to vector<8x128xf32>
    %36 = arith.addf %35, %34 : vector<8x128xf32>
    %37 = arith.divf %35, %36 : vector<8x128xf32>
    %38 = math.tanh %32 : vector<8x128xf32>
    %39 = vector.extract_strided_slice %37 {offsets = [0, 0], sizes = [8, 32], strides = [1, 1]} : vector<8x128xf32> to vector<8x32xf32>
    %40 = vector.extract_strided_slice %37 {offsets = [0, 32], sizes = [8, 32], strides = [1, 1]} : vector<8x128xf32> to vector<8x32xf32>
    %41 = vector.extract_strided_slice %38 {offsets = [0, 64], sizes = [8, 32], strides = [1, 1]} : vector<8x128xf32> to vector<8x32xf32>
    %42 = vector.extract_strided_slice %37 {offsets = [0, 96], sizes = [8, 32], strides = [1, 1]} : vector<8x128xf32> to vector<8x32xf32>
    %43 = arith.mulf %40, %8 : vector<8x32xf32>
    %44 = arith.mulf %39, %41 : vector<8x32xf32>
    %45 = arith.addf %43, %44 : vector<8x32xf32>
    %46 = math.tanh %45 : vector<8x32xf32>
    %47 = arith.mulf %42, %46 : vector<8x32xf32>
    %48 = arith.index_cast %c0_i32 : i32 to index
    %c0_13 = arith.constant 0 : index
    %c0_14 = arith.constant 0 : index
    %49 = vector.load %arg9[%48, %c0_13, %c0_14] : memref<8x8x32xf32, #tpu.memory_space<vmem>>, vector<1x8x32xf32>
    %50 = vector.shape_cast %49 : vector<1x8x32xf32> to vector<8x32xf32>
    %51 = vector.shape_cast %47 : vector<8x32xf32> to vector<1x8x32xf32>
    tpu.vector_store %arg9[%48, %c0_13, %c0_14], %51 {strides = array<i32>} : memref<8x8x32xf32, #tpu.memory_space<vmem>>, vector<1x8x32xf32>,
    %c1_i32 = arith.constant 1 : i32
    %52 = arith.index_cast %c1_i32 : i32 to index
    %c0_15 = arith.constant 0 : index
    %c0_16 = arith.constant 0 : index
    %53 = vector.load %arg1[%52, %c0_15, %c0_16] : memref<8x8x4xf32, #tpu.memory_space<vmem>>, vector<1x8x4xf32>
    %54 = vector.shape_cast %53 : vector<1x8x4xf32> to vector<8x4xf32>
    %55 = tpu.concatenate %54, %29 in 1 : vector<8x4xf32>, vector<8x32xf32> -> vector<8x36xf32>
    %cst_17 = arith.constant dense<0.000000e+00> : vector<8x128xf32>
    %56 = tpu.matmul %55, %0, %cst_17 {dimension_numbers = #tpu.dot_dimension_numbers<[1], [0], [0], [1], [0, 0, 1, 1], [], []>} : vector<8x36xf32>, vector<36x128xf32>, vector<8x128xf32> -> vector<8x128xf32>
    %57 = arith.addf %56, %4 : vector<8x128xf32>
    %58 = arith.negf %57 : vector<8x128xf32>
    %59 = math.exp %58 : vector<8x128xf32>
    %cst_18 = arith.constant 1.000000e+00 : f32
    %60 = vector.broadcast %cst_18 : f32 to vector<8x128xf32>
    %61 = arith.addf %60, %59 : vector<8x128xf32>
    %62 = arith.divf %60, %61 : vector<8x128xf32>
    %63 = math.tanh %57 : vector<8x128xf32>
    %64 = vector.extract_strided_slice %62 {offsets = [0, 0], sizes = [8, 32], strides = [1, 1]} : vector<8x128xf32> to vector<8x32xf32>
    %65 = vector.extract_strided_slice %62 {offsets = [0, 32], sizes = [8, 32], strides = [1, 1]} : vector<8x128xf32> to vector<8x32xf32>
    %66 = vector.extract_strided_slice %63 {offsets = [0, 64], sizes = [8, 32], strides = [1, 1]} : vector<8x128xf32> to vector<8x32xf32>
    %67 = vector.extract_strided_slice %62 {offsets = [0, 96], sizes = [8, 32], strides = [1, 1]} : vector<8x128xf32> to vector<8x32xf32>
    %68 = arith.mulf %65, %27 : vector<8x32xf32>
    %69 = arith.mulf %64, %66 : vector<8x32xf32>
    %70 = arith.addf %68, %69 : vector<8x32xf32>
    %71 = math.tanh %70 : vector<8x32xf32>
    %72 = arith.mulf %67, %71 : vector<8x32xf32>
    %73 = tpu.concatenate %72, %47 in 1 : vector<8x32xf32>, vector<8x32xf32> -> vector<8x64xf32>
    %cst_19 = arith.constant dense<0.000000e+00> : vector<8x128xf32>
    %74 = tpu.matmul %73, %1, %cst_19 {dimension_numbers = #tpu.dot_dimension_numbers<[1], [0], [0], [1], [0, 0, 1, 1], [], []>} : vector<8x64xf32>, vector<64x128xf32>, vector<8x128xf32> -> vector<8x128xf32>
    %75 = arith.addf %74, %7 : vector<8x128xf32>
    %76 = arith.negf %75 : vector<8x128xf32>
    %77 = math.exp %76 : vector<8x128xf32>
    %cst_20 = arith.constant 1.000000e+00 : f32
    %78 = vector.broadcast %cst_20 : f32 to vector<8x128xf32>
    %79 = arith.addf %78, %77 : vector<8x128xf32>
    %80 = arith.divf %78, %79 : vector<8x128xf32>
    %81 = math.tanh %75 : vector<8x128xf32>
    %82 = vector.extract_strided_slice %80 {offsets = [0, 0], sizes = [8, 32], strides = [1, 1]} : vector<8x128xf32> to vector<8x32xf32>
    %83 = vector.extract_strided_slice %80 {offsets = [0, 32], sizes = [8, 32], strides = [1, 1]} : vector<8x128xf32> to vector<8x32xf32>
    %84 = vector.extract_strided_slice %81 {offsets = [0, 64], sizes = [8, 32], strides = [1, 1]} : vector<8x128xf32> to vector<8x32xf32>
    %85 = vector.extract_strided_slice %80 {offsets = [0, 96], sizes = [8, 32], strides = [1, 1]} : vector<8x128xf32> to vector<8x32xf32>
    %86 = arith.mulf %83, %45 : vector<8x32xf32>
    %87 = arith.mulf %82, %84 : vector<8x32xf32>
    %88 = arith.addf %86, %87 : vector<8x32xf32>
    %89 = math.tanh %88 : vector<8x32xf32>
    %90 = arith.mulf %85, %89 : vector<8x32xf32>
    %91 = arith.index_cast %c1_i32 : i32 to index
    %c0_21 = arith.constant 0 : index
    %c0_22 = arith.constant 0 : index
    %92 = vector.load %arg9[%91, %c0_21, %c0_22] : memref<8x8x32xf32, #tpu.memory_space<vmem>>, vector<1x8x32xf32>
    %93 = vector.shape_cast %92 : vector<1x8x32xf32> to vector<8x32xf32>
    %94 = vector.shape_cast %90 : vector<8x32xf32> to vector<1x8x32xf32>
    tpu.vector_store %arg9[%91, %c0_21, %c0_22], %94 {strides = array<i32>} : memref<8x8x32xf32, #tpu.memory_space<vmem>>, vector<1x8x32xf32>,
    %c2_i32 = arith.constant 2 : i32
    %95 = arith.index_cast %c2_i32 : i32 to index
    %c0_23 = arith.constant 0 : index
    %c0_24 = arith.constant 0 : index
    %96 = vector.load %arg1[%95, %c0_23, %c0_24] : memref<8x8x4xf32, #tpu.memory_space<vmem>>, vector<1x8x4xf32>
    %97 = vector.shape_cast %96 : vector<1x8x4xf32> to vector<8x4xf32>
    %98 = tpu.concatenate %97, %72 in 1 : vector<8x4xf32>, vector<8x32xf32> -> vector<8x36xf32>
    %cst_25 = arith.constant dense<0.000000e+00> : vector<8x128xf32>
    %99 = tpu.matmul %98, %0, %cst_25 {dimension_numbers = #tpu.dot_dimension_numbers<[1], [0], [0], [1], [0, 0, 1, 1], [], []>} : vector<8x36xf32>, vector<36x128xf32>, vector<8x128xf32> -> vector<8x128xf32>
    %100 = arith.addf %99, %4 : vector<8x128xf32>
    %101 = arith.negf %100 : vector<8x128xf32>
    %102 = math.exp %101 : vector<8x128xf32>
    %cst_26 = arith.constant 1.000000e+00 : f32
    %103 = vector.broadcast %cst_26 : f32 to vector<8x128xf32>
    %104 = arith.addf %103, %102 : vector<8x128xf32>
    %105 = arith.divf %103, %104 : vector<8x128xf32>
    %106 = math.tanh %100 : vector<8x128xf32>
    %107 = vector.extract_strided_slice %105 {offsets = [0, 0], sizes = [8, 32], strides = [1, 1]} : vector<8x128xf32> to vector<8x32xf32>
    %108 = vector.extract_strided_slice %105 {offsets = [0, 32], sizes = [8, 32], strides = [1, 1]} : vector<8x128xf32> to vector<8x32xf32>
    %109 = vector.extract_strided_slice %106 {offsets = [0, 64], sizes = [8, 32], strides = [1, 1]} : vector<8x128xf32> to vector<8x32xf32>
    %110 = vector.extract_strided_slice %105 {offsets = [0, 96], sizes = [8, 32], strides = [1, 1]} : vector<8x128xf32> to vector<8x32xf32>
    %111 = arith.mulf %108, %70 : vector<8x32xf32>
    %112 = arith.mulf %107, %109 : vector<8x32xf32>
    %113 = arith.addf %111, %112 : vector<8x32xf32>
    %114 = math.tanh %113 : vector<8x32xf32>
    %115 = arith.mulf %110, %114 : vector<8x32xf32>
    %116 = tpu.concatenate %115, %90 in 1 : vector<8x32xf32>, vector<8x32xf32> -> vector<8x64xf32>
    %cst_27 = arith.constant dense<0.000000e+00> : vector<8x128xf32>
    %117 = tpu.matmul %116, %1, %cst_27 {dimension_numbers = #tpu.dot_dimension_numbers<[1], [0], [0], [1], [0, 0, 1, 1], [], []>} : vector<8x64xf32>, vector<64x128xf32>, vector<8x128xf32> -> vector<8x128xf32>
    %118 = arith.addf %117, %7 : vector<8x128xf32>
    %119 = arith.negf %118 : vector<8x128xf32>
    %120 = math.exp %119 : vector<8x128xf32>
    %cst_28 = arith.constant 1.000000e+00 : f32
    %121 = vector.broadcast %cst_28 : f32 to vector<8x128xf32>
    %122 = arith.addf %121, %120 : vector<8x128xf32>
    %123 = arith.divf %121, %122 : vector<8x128xf32>
    %124 = math.tanh %118 : vector<8x128xf32>
    %125 = vector.extract_strided_slice %123 {offsets = [0, 0], sizes = [8, 32], strides = [1, 1]} : vector<8x128xf32> to vector<8x32xf32>
    %126 = vector.extract_strided_slice %123 {offsets = [0, 32], sizes = [8, 32], strides = [1, 1]} : vector<8x128xf32> to vector<8x32xf32>
    %127 = vector.extract_strided_slice %124 {offsets = [0, 64], sizes = [8, 32], strides = [1, 1]} : vector<8x128xf32> to vector<8x32xf32>
    %128 = vector.extract_strided_slice %123 {offsets = [0, 96], sizes = [8, 32], strides = [1, 1]} : vector<8x128xf32> to vector<8x32xf32>
    %129 = arith.mulf %126, %88 : vector<8x32xf32>
    %130 = arith.mulf %125, %127 : vector<8x32xf32>
    %131 = arith.addf %129, %130 : vector<8x32xf32>
    %132 = math.tanh %131 : vector<8x32xf32>
    %133 = arith.mulf %128, %132 : vector<8x32xf32>
    %134 = arith.index_cast %c2_i32 : i32 to index
    %c0_29 = arith.constant 0 : index
    %c0_30 = arith.constant 0 : index
    %135 = vector.load %arg9[%134, %c0_29, %c0_30] : memref<8x8x32xf32, #tpu.memory_space<vmem>>, vector<1x8x32xf32>
    %136 = vector.shape_cast %135 : vector<1x8x32xf32> to vector<8x32xf32>
    %137 = vector.shape_cast %133 : vector<8x32xf32> to vector<1x8x32xf32>
    tpu.vector_store %arg9[%134, %c0_29, %c0_30], %137 {strides = array<i32>} : memref<8x8x32xf32, #tpu.memory_space<vmem>>, vector<1x8x32xf32>,
    %c3_i32 = arith.constant 3 : i32
    %138 = arith.index_cast %c3_i32 : i32 to index
    %c0_31 = arith.constant 0 : index
    %c0_32 = arith.constant 0 : index
    %139 = vector.load %arg1[%138, %c0_31, %c0_32] : memref<8x8x4xf32, #tpu.memory_space<vmem>>, vector<1x8x4xf32>
    %140 = vector.shape_cast %139 : vector<1x8x4xf32> to vector<8x4xf32>
    %141 = tpu.concatenate %140, %115 in 1 : vector<8x4xf32>, vector<8x32xf32> -> vector<8x36xf32>
    %cst_33 = arith.constant dense<0.000000e+00> : vector<8x128xf32>
    %142 = tpu.matmul %141, %0, %cst_33 {dimension_numbers = #tpu.dot_dimension_numbers<[1], [0], [0], [1], [0, 0, 1, 1], [], []>} : vector<8x36xf32>, vector<36x128xf32>, vector<8x128xf32> -> vector<8x128xf32>
    %143 = arith.addf %142, %4 : vector<8x128xf32>
    %144 = arith.negf %143 : vector<8x128xf32>
    %145 = math.exp %144 : vector<8x128xf32>
    %cst_34 = arith.constant 1.000000e+00 : f32
    %146 = vector.broadcast %cst_34 : f32 to vector<8x128xf32>
    %147 = arith.addf %146, %145 : vector<8x128xf32>
    %148 = arith.divf %146, %147 : vector<8x128xf32>
    %149 = math.tanh %143 : vector<8x128xf32>
    %150 = vector.extract_strided_slice %148 {offsets = [0, 0], sizes = [8, 32], strides = [1, 1]} : vector<8x128xf32> to vector<8x32xf32>
    %151 = vector.extract_strided_slice %148 {offsets = [0, 32], sizes = [8, 32], strides = [1, 1]} : vector<8x128xf32> to vector<8x32xf32>
    %152 = vector.extract_strided_slice %149 {offsets = [0, 64], sizes = [8, 32], strides = [1, 1]} : vector<8x128xf32> to vector<8x32xf32>
    %153 = vector.extract_strided_slice %148 {offsets = [0, 96], sizes = [8, 32], strides = [1, 1]} : vector<8x128xf32> to vector<8x32xf32>
    %154 = arith.mulf %151, %113 : vector<8x32xf32>
    %155 = arith.mulf %150, %152 : vector<8x32xf32>
    %156 = arith.addf %154, %155 : vector<8x32xf32>
    %157 = math.tanh %156 : vector<8x32xf32>
    %158 = arith.mulf %153, %157 : vector<8x32xf32>
    %159 = tpu.concatenate %158, %133 in 1 : vector<8x32xf32>, vector<8x32xf32> -> vector<8x64xf32>
    %cst_35 = arith.constant dense<0.000000e+00> : vector<8x128xf32>
    %160 = tpu.matmul %159, %1, %cst_35 {dimension_numbers = #tpu.dot_dimension_numbers<[1], [0], [0], [1], [0, 0, 1, 1], [], []>} : vector<8x64xf32>, vector<64x128xf32>, vector<8x128xf32> -> vector<8x128xf32>
    %161 = arith.addf %160, %7 : vector<8x128xf32>
    %162 = arith.negf %161 : vector<8x128xf32>
    %163 = math.exp %162 : vector<8x128xf32>
    %cst_36 = arith.constant 1.000000e+00 : f32
    %164 = vector.broadcast %cst_36 : f32 to vector<8x128xf32>
    %165 = arith.addf %164, %163 : vector<8x128xf32>
    %166 = arith.divf %164, %165 : vector<8x128xf32>
    %167 = math.tanh %161 : vector<8x128xf32>
    %168 = vector.extract_strided_slice %166 {offsets = [0, 0], sizes = [8, 32], strides = [1, 1]} : vector<8x128xf32> to vector<8x32xf32>
    %169 = vector.extract_strided_slice %166 {offsets = [0, 32], sizes = [8, 32], strides = [1, 1]} : vector<8x128xf32> to vector<8x32xf32>
    %170 = vector.extract_strided_slice %167 {offsets = [0, 64], sizes = [8, 32], strides = [1, 1]} : vector<8x128xf32> to vector<8x32xf32>
    %171 = vector.extract_strided_slice %166 {offsets = [0, 96], sizes = [8, 32], strides = [1, 1]} : vector<8x128xf32> to vector<8x32xf32>
    %172 = arith.mulf %169, %131 : vector<8x32xf32>
    %173 = arith.mulf %168, %170 : vector<8x32xf32>
    %174 = arith.addf %172, %173 : vector<8x32xf32>
    %175 = math.tanh %174 : vector<8x32xf32>
    %176 = arith.mulf %171, %175 : vector<8x32xf32>
    %177 = arith.index_cast %c3_i32 : i32 to index
    %c0_37 = arith.constant 0 : index
    %c0_38 = arith.constant 0 : index
    %178 = vector.load %arg9[%177, %c0_37, %c0_38] : memref<8x8x32xf32, #tpu.memory_space<vmem>>, vector<1x8x32xf32>
    %179 = vector.shape_cast %178 : vector<1x8x32xf32> to vector<8x32xf32>
    %180 = vector.shape_cast %176 : vector<8x32xf32> to vector<1x8x32xf32>
    tpu.vector_store %arg9[%177, %c0_37, %c0_38], %180 {strides = array<i32>} : memref<8x8x32xf32, #tpu.memory_space<vmem>>, vector<1x8x32xf32>,
    %c4_i32 = arith.constant 4 : i32
    %181 = arith.index_cast %c4_i32 : i32 to index
    %c0_39 = arith.constant 0 : index
    %c0_40 = arith.constant 0 : index
    %182 = vector.load %arg1[%181, %c0_39, %c0_40] : memref<8x8x4xf32, #tpu.memory_space<vmem>>, vector<1x8x4xf32>
    %183 = vector.shape_cast %182 : vector<1x8x4xf32> to vector<8x4xf32>
    %184 = tpu.concatenate %183, %158 in 1 : vector<8x4xf32>, vector<8x32xf32> -> vector<8x36xf32>
    %cst_41 = arith.constant dense<0.000000e+00> : vector<8x128xf32>
    %185 = tpu.matmul %184, %0, %cst_41 {dimension_numbers = #tpu.dot_dimension_numbers<[1], [0], [0], [1], [0, 0, 1, 1], [], []>} : vector<8x36xf32>, vector<36x128xf32>, vector<8x128xf32> -> vector<8x128xf32>
    %186 = arith.addf %185, %4 : vector<8x128xf32>
    %187 = arith.negf %186 : vector<8x128xf32>
    %188 = math.exp %187 : vector<8x128xf32>
    %cst_42 = arith.constant 1.000000e+00 : f32
    %189 = vector.broadcast %cst_42 : f32 to vector<8x128xf32>
    %190 = arith.addf %189, %188 : vector<8x128xf32>
    %191 = arith.divf %189, %190 : vector<8x128xf32>
    %192 = math.tanh %186 : vector<8x128xf32>
    %193 = vector.extract_strided_slice %191 {offsets = [0, 0], sizes = [8, 32], strides = [1, 1]} : vector<8x128xf32> to vector<8x32xf32>
    %194 = vector.extract_strided_slice %191 {offsets = [0, 32], sizes = [8, 32], strides = [1, 1]} : vector<8x128xf32> to vector<8x32xf32>
    %195 = vector.extract_strided_slice %192 {offsets = [0, 64], sizes = [8, 32], strides = [1, 1]} : vector<8x128xf32> to vector<8x32xf32>
    %196 = vector.extract_strided_slice %191 {offsets = [0, 96], sizes = [8, 32], strides = [1, 1]} : vector<8x128xf32> to vector<8x32xf32>
    %197 = arith.mulf %194, %156 : vector<8x32xf32>
    %198 = arith.mulf %193, %195 : vector<8x32xf32>
    %199 = arith.addf %197, %198 : vector<8x32xf32>
    %200 = math.tanh %199 : vector<8x32xf32>
    %201 = arith.mulf %196, %200 : vector<8x32xf32>
    %202 = tpu.concatenate %201, %176 in 1 : vector<8x32xf32>, vector<8x32xf32> -> vector<8x64xf32>
    %cst_43 = arith.constant dense<0.000000e+00> : vector<8x128xf32>
    %203 = tpu.matmul %202, %1, %cst_43 {dimension_numbers = #tpu.dot_dimension_numbers<[1], [0], [0], [1], [0, 0, 1, 1], [], []>} : vector<8x64xf32>, vector<64x128xf32>, vector<8x128xf32> -> vector<8x128xf32>
    %204 = arith.addf %203, %7 : vector<8x128xf32>
    %205 = arith.negf %204 : vector<8x128xf32>
    %206 = math.exp %205 : vector<8x128xf32>
    %cst_44 = arith.constant 1.000000e+00 : f32
    %207 = vector.broadcast %cst_44 : f32 to vector<8x128xf32>
    %208 = arith.addf %207, %206 : vector<8x128xf32>
    %209 = arith.divf %207, %208 : vector<8x128xf32>
    %210 = math.tanh %204 : vector<8x128xf32>
    %211 = vector.extract_strided_slice %209 {offsets = [0, 0], sizes = [8, 32], strides = [1, 1]} : vector<8x128xf32> to vector<8x32xf32>
    %212 = vector.extract_strided_slice %209 {offsets = [0, 32], sizes = [8, 32], strides = [1, 1]} : vector<8x128xf32> to vector<8x32xf32>
    %213 = vector.extract_strided_slice %210 {offsets = [0, 64], sizes = [8, 32], strides = [1, 1]} : vector<8x128xf32> to vector<8x32xf32>
    %214 = vector.extract_strided_slice %209 {offsets = [0, 96], sizes = [8, 32], strides = [1, 1]} : vector<8x128xf32> to vector<8x32xf32>
    %215 = arith.mulf %212, %174 : vector<8x32xf32>
    %216 = arith.mulf %211, %213 : vector<8x32xf32>
    %217 = arith.addf %215, %216 : vector<8x32xf32>
    %218 = math.tanh %217 : vector<8x32xf32>
    %219 = arith.mulf %214, %218 : vector<8x32xf32>
    %220 = arith.index_cast %c4_i32 : i32 to index
    %c0_45 = arith.constant 0 : index
    %c0_46 = arith.constant 0 : index
    %221 = vector.load %arg9[%220, %c0_45, %c0_46] : memref<8x8x32xf32, #tpu.memory_space<vmem>>, vector<1x8x32xf32>
    %222 = vector.shape_cast %221 : vector<1x8x32xf32> to vector<8x32xf32>
    %223 = vector.shape_cast %219 : vector<8x32xf32> to vector<1x8x32xf32>
    tpu.vector_store %arg9[%220, %c0_45, %c0_46], %223 {strides = array<i32>} : memref<8x8x32xf32, #tpu.memory_space<vmem>>, vector<1x8x32xf32>,
    %c5_i32 = arith.constant 5 : i32
    %224 = arith.index_cast %c5_i32 : i32 to index
    %c0_47 = arith.constant 0 : index
    %c0_48 = arith.constant 0 : index
    %225 = vector.load %arg1[%224, %c0_47, %c0_48] : memref<8x8x4xf32, #tpu.memory_space<vmem>>, vector<1x8x4xf32>
    %226 = vector.shape_cast %225 : vector<1x8x4xf32> to vector<8x4xf32>
    %227 = tpu.concatenate %226, %201 in 1 : vector<8x4xf32>, vector<8x32xf32> -> vector<8x36xf32>
    %cst_49 = arith.constant dense<0.000000e+00> : vector<8x128xf32>
    %228 = tpu.matmul %227, %0, %cst_49 {dimension_numbers = #tpu.dot_dimension_numbers<[1], [0], [0], [1], [0, 0, 1, 1], [], []>} : vector<8x36xf32>, vector<36x128xf32>, vector<8x128xf32> -> vector<8x128xf32>
    %229 = arith.addf %228, %4 : vector<8x128xf32>
    %230 = arith.negf %229 : vector<8x128xf32>
    %231 = math.exp %230 : vector<8x128xf32>
    %cst_50 = arith.constant 1.000000e+00 : f32
    %232 = vector.broadcast %cst_50 : f32 to vector<8x128xf32>
    %233 = arith.addf %232, %231 : vector<8x128xf32>
    %234 = arith.divf %232, %233 : vector<8x128xf32>
    %235 = math.tanh %229 : vector<8x128xf32>
    %236 = vector.extract_strided_slice %234 {offsets = [0, 0], sizes = [8, 32], strides = [1, 1]} : vector<8x128xf32> to vector<8x32xf32>
    %237 = vector.extract_strided_slice %234 {offsets = [0, 32], sizes = [8, 32], strides = [1, 1]} : vector<8x128xf32> to vector<8x32xf32>
    %238 = vector.extract_strided_slice %235 {offsets = [0, 64], sizes = [8, 32], strides = [1, 1]} : vector<8x128xf32> to vector<8x32xf32>
    %239 = vector.extract_strided_slice %234 {offsets = [0, 96], sizes = [8, 32], strides = [1, 1]} : vector<8x128xf32> to vector<8x32xf32>
    %240 = arith.mulf %237, %199 : vector<8x32xf32>
    %241 = arith.mulf %236, %238 : vector<8x32xf32>
    %242 = arith.addf %240, %241 : vector<8x32xf32>
    %243 = math.tanh %242 : vector<8x32xf32>
    %244 = arith.mulf %239, %243 : vector<8x32xf32>
    %245 = tpu.concatenate %244, %219 in 1 : vector<8x32xf32>, vector<8x32xf32> -> vector<8x64xf32>
    %cst_51 = arith.constant dense<0.000000e+00> : vector<8x128xf32>
    %246 = tpu.matmul %245, %1, %cst_51 {dimension_numbers = #tpu.dot_dimension_numbers<[1], [0], [0], [1], [0, 0, 1, 1], [], []>} : vector<8x64xf32>, vector<64x128xf32>, vector<8x128xf32> -> vector<8x128xf32>
    %247 = arith.addf %246, %7 : vector<8x128xf32>
    %248 = arith.negf %247 : vector<8x128xf32>
    %249 = math.exp %248 : vector<8x128xf32>
    %cst_52 = arith.constant 1.000000e+00 : f32
    %250 = vector.broadcast %cst_52 : f32 to vector<8x128xf32>
    %251 = arith.addf %250, %249 : vector<8x128xf32>
    %252 = arith.divf %250, %251 : vector<8x128xf32>
    %253 = math.tanh %247 : vector<8x128xf32>
    %254 = vector.extract_strided_slice %252 {offsets = [0, 0], sizes = [8, 32], strides = [1, 1]} : vector<8x128xf32> to vector<8x32xf32>
    %255 = vector.extract_strided_slice %252 {offsets = [0, 32], sizes = [8, 32], strides = [1, 1]} : vector<8x128xf32> to vector<8x32xf32>
    %256 = vector.extract_strided_slice %253 {offsets = [0, 64], sizes = [8, 32], strides = [1, 1]} : vector<8x128xf32> to vector<8x32xf32>
    %257 = vector.extract_strided_slice %252 {offsets = [0, 96], sizes = [8, 32], strides = [1, 1]} : vector<8x128xf32> to vector<8x32xf32>
    %258 = arith.mulf %255, %217 : vector<8x32xf32>
    %259 = arith.mulf %254, %256 : vector<8x32xf32>
    %260 = arith.addf %258, %259 : vector<8x32xf32>
    %261 = math.tanh %260 : vector<8x32xf32>
    %262 = arith.mulf %257, %261 : vector<8x32xf32>
    %263 = arith.index_cast %c5_i32 : i32 to index
    %c0_53 = arith.constant 0 : index
    %c0_54 = arith.constant 0 : index
    %264 = vector.load %arg9[%263, %c0_53, %c0_54] : memref<8x8x32xf32, #tpu.memory_space<vmem>>, vector<1x8x32xf32>
    %265 = vector.shape_cast %264 : vector<1x8x32xf32> to vector<8x32xf32>
    %266 = vector.shape_cast %262 : vector<8x32xf32> to vector<1x8x32xf32>
    tpu.vector_store %arg9[%263, %c0_53, %c0_54], %266 {strides = array<i32>} : memref<8x8x32xf32, #tpu.memory_space<vmem>>, vector<1x8x32xf32>,
    %c6_i32 = arith.constant 6 : i32
    %267 = arith.index_cast %c6_i32 : i32 to index
    %c0_55 = arith.constant 0 : index
    %c0_56 = arith.constant 0 : index
    %268 = vector.load %arg1[%267, %c0_55, %c0_56] : memref<8x8x4xf32, #tpu.memory_space<vmem>>, vector<1x8x4xf32>
    %269 = vector.shape_cast %268 : vector<1x8x4xf32> to vector<8x4xf32>
    %270 = tpu.concatenate %269, %244 in 1 : vector<8x4xf32>, vector<8x32xf32> -> vector<8x36xf32>
    %cst_57 = arith.constant dense<0.000000e+00> : vector<8x128xf32>
    %271 = tpu.matmul %270, %0, %cst_57 {dimension_numbers = #tpu.dot_dimension_numbers<[1], [0], [0], [1], [0, 0, 1, 1], [], []>} : vector<8x36xf32>, vector<36x128xf32>, vector<8x128xf32> -> vector<8x128xf32>
    %272 = arith.addf %271, %4 : vector<8x128xf32>
    %273 = arith.negf %272 : vector<8x128xf32>
    %274 = math.exp %273 : vector<8x128xf32>
    %cst_58 = arith.constant 1.000000e+00 : f32
    %275 = vector.broadcast %cst_58 : f32 to vector<8x128xf32>
    %276 = arith.addf %275, %274 : vector<8x128xf32>
    %277 = arith.divf %275, %276 : vector<8x128xf32>
    %278 = math.tanh %272 : vector<8x128xf32>
    %279 = vector.extract_strided_slice %277 {offsets = [0, 0], sizes = [8, 32], strides = [1, 1]} : vector<8x128xf32> to vector<8x32xf32>
    %280 = vector.extract_strided_slice %277 {offsets = [0, 32], sizes = [8, 32], strides = [1, 1]} : vector<8x128xf32> to vector<8x32xf32>
    %281 = vector.extract_strided_slice %278 {offsets = [0, 64], sizes = [8, 32], strides = [1, 1]} : vector<8x128xf32> to vector<8x32xf32>
    %282 = vector.extract_strided_slice %277 {offsets = [0, 96], sizes = [8, 32], strides = [1, 1]} : vector<8x128xf32> to vector<8x32xf32>
    %283 = arith.mulf %280, %242 : vector<8x32xf32>
    %284 = arith.mulf %279, %281 : vector<8x32xf32>
    %285 = arith.addf %283, %284 : vector<8x32xf32>
    %286 = math.tanh %285 : vector<8x32xf32>
    %287 = arith.mulf %282, %286 : vector<8x32xf32>
    %288 = tpu.concatenate %287, %262 in 1 : vector<8x32xf32>, vector<8x32xf32> -> vector<8x64xf32>
    %cst_59 = arith.constant dense<0.000000e+00> : vector<8x128xf32>
    %289 = tpu.matmul %288, %1, %cst_59 {dimension_numbers = #tpu.dot_dimension_numbers<[1], [0], [0], [1], [0, 0, 1, 1], [], []>} : vector<8x64xf32>, vector<64x128xf32>, vector<8x128xf32> -> vector<8x128xf32>
    %290 = arith.addf %289, %7 : vector<8x128xf32>
    %291 = arith.negf %290 : vector<8x128xf32>
    %292 = math.exp %291 : vector<8x128xf32>
    %cst_60 = arith.constant 1.000000e+00 : f32
    %293 = vector.broadcast %cst_60 : f32 to vector<8x128xf32>
    %294 = arith.addf %293, %292 : vector<8x128xf32>
    %295 = arith.divf %293, %294 : vector<8x128xf32>
    %296 = math.tanh %290 : vector<8x128xf32>
    %297 = vector.extract_strided_slice %295 {offsets = [0, 0], sizes = [8, 32], strides = [1, 1]} : vector<8x128xf32> to vector<8x32xf32>
    %298 = vector.extract_strided_slice %295 {offsets = [0, 32], sizes = [8, 32], strides = [1, 1]} : vector<8x128xf32> to vector<8x32xf32>
    %299 = vector.extract_strided_slice %296 {offsets = [0, 64], sizes = [8, 32], strides = [1, 1]} : vector<8x128xf32> to vector<8x32xf32>
    %300 = vector.extract_strided_slice %295 {offsets = [0, 96], sizes = [8, 32], strides = [1, 1]} : vector<8x128xf32> to vector<8x32xf32>
    %301 = arith.mulf %298, %260 : vector<8x32xf32>
    %302 = arith.mulf %297, %299 : vector<8x32xf32>
    %303 = arith.addf %301, %302 : vector<8x32xf32>
    %304 = math.tanh %303 : vector<8x32xf32>
    %305 = arith.mulf %300, %304 : vector<8x32xf32>
    %306 = arith.index_cast %c6_i32 : i32 to index
    %c0_61 = arith.constant 0 : index
    %c0_62 = arith.constant 0 : index
    %307 = vector.load %arg9[%306, %c0_61, %c0_62] : memref<8x8x32xf32, #tpu.memory_space<vmem>>, vector<1x8x32xf32>
    %308 = vector.shape_cast %307 : vector<1x8x32xf32> to vector<8x32xf32>
    %309 = vector.shape_cast %305 : vector<8x32xf32> to vector<1x8x32xf32>
    tpu.vector_store %arg9[%306, %c0_61, %c0_62], %309 {strides = array<i32>} : memref<8x8x32xf32, #tpu.memory_space<vmem>>, vector<1x8x32xf32>,
    %c7_i32 = arith.constant 7 : i32
    %310 = arith.index_cast %c7_i32 : i32 to index
    %c0_63 = arith.constant 0 : index
    %c0_64 = arith.constant 0 : index
    %311 = vector.load %arg1[%310, %c0_63, %c0_64] : memref<8x8x4xf32, #tpu.memory_space<vmem>>, vector<1x8x4xf32>
    %312 = vector.shape_cast %311 : vector<1x8x4xf32> to vector<8x4xf32>
    %313 = tpu.concatenate %312, %287 in 1 : vector<8x4xf32>, vector<8x32xf32> -> vector<8x36xf32>
    %cst_65 = arith.constant dense<0.000000e+00> : vector<8x128xf32>
    %314 = tpu.matmul %313, %0, %cst_65 {dimension_numbers = #tpu.dot_dimension_numbers<[1], [0], [0], [1], [0, 0, 1, 1], [], []>} : vector<8x36xf32>, vector<36x128xf32>, vector<8x128xf32> -> vector<8x128xf32>
    %315 = arith.addf %314, %4 : vector<8x128xf32>
    %316 = arith.negf %315 : vector<8x128xf32>
    %317 = math.exp %316 : vector<8x128xf32>
    %cst_66 = arith.constant 1.000000e+00 : f32
    %318 = vector.broadcast %cst_66 : f32 to vector<8x128xf32>
    %319 = arith.addf %318, %317 : vector<8x128xf32>
    %320 = arith.divf %318, %319 : vector<8x128xf32>
    %321 = math.tanh %315 : vector<8x128xf32>
    %322 = vector.extract_strided_slice %320 {offsets = [0, 0], sizes = [8, 32], strides = [1, 1]} : vector<8x128xf32> to vector<8x32xf32>
    %323 = vector.extract_strided_slice %320 {offsets = [0, 32], sizes = [8, 32], strides = [1, 1]} : vector<8x128xf32> to vector<8x32xf32>
    %324 = vector.extract_strided_slice %321 {offsets = [0, 64], sizes = [8, 32], strides = [1, 1]} : vector<8x128xf32> to vector<8x32xf32>
    %325 = vector.extract_strided_slice %320 {offsets = [0, 96], sizes = [8, 32], strides = [1, 1]} : vector<8x128xf32> to vector<8x32xf32>
    %326 = arith.mulf %323, %285 : vector<8x32xf32>
    %327 = arith.mulf %322, %324 : vector<8x32xf32>
    %328 = arith.addf %326, %327 : vector<8x32xf32>
    %329 = math.tanh %328 : vector<8x32xf32>
    %330 = arith.mulf %325, %329 : vector<8x32xf32>
    %331 = tpu.concatenate %330, %305 in 1 : vector<8x32xf32>, vector<8x32xf32> -> vector<8x64xf32>
    %cst_67 = arith.constant dense<0.000000e+00> : vector<8x128xf32>
    %332 = tpu.matmul %331, %1, %cst_67 {dimension_numbers = #tpu.dot_dimension_numbers<[1], [0], [0], [1], [0, 0, 1, 1], [], []>} : vector<8x64xf32>, vector<64x128xf32>, vector<8x128xf32> -> vector<8x128xf32>
    %333 = arith.addf %332, %7 : vector<8x128xf32>
    %334 = arith.negf %333 : vector<8x128xf32>
    %335 = math.exp %334 : vector<8x128xf32>
    %cst_68 = arith.constant 1.000000e+00 : f32
    %336 = vector.broadcast %cst_68 : f32 to vector<8x128xf32>
    %337 = arith.addf %336, %335 : vector<8x128xf32>
    %338 = arith.divf %336, %337 : vector<8x128xf32>
    %339 = math.tanh %333 : vector<8x128xf32>
    %340 = vector.extract_strided_slice %338 {offsets = [0, 0], sizes = [8, 32], strides = [1, 1]} : vector<8x128xf32> to vector<8x32xf32>
    %341 = vector.extract_strided_slice %338 {offsets = [0, 32], sizes = [8, 32], strides = [1, 1]} : vector<8x128xf32> to vector<8x32xf32>
    %342 = vector.extract_strided_slice %339 {offsets = [0, 64], sizes = [8, 32], strides = [1, 1]} : vector<8x128xf32> to vector<8x32xf32>
    %343 = vector.extract_strided_slice %338 {offsets = [0, 96], sizes = [8, 32], strides = [1, 1]} : vector<8x128xf32> to vector<8x32xf32>
    %344 = arith.mulf %341, %303 : vector<8x32xf32>
    %345 = arith.mulf %340, %342 : vector<8x32xf32>
    %346 = arith.addf %344, %345 : vector<8x32xf32>
    %347 = math.tanh %346 : vector<8x32xf32>
    %348 = arith.mulf %343, %347 : vector<8x32xf32>
    %349 = arith.index_cast %c7_i32 : i32 to index
    %c0_69 = arith.constant 0 : index
    %c0_70 = arith.constant 0 : index
    %350 = vector.load %arg9[%349, %c0_69, %c0_70] : memref<8x8x32xf32, #tpu.memory_space<vmem>>, vector<1x8x32xf32>
    %351 = vector.shape_cast %350 : vector<1x8x32xf32> to vector<8x32xf32>
    %352 = vector.shape_cast %348 : vector<8x32xf32> to vector<1x8x32xf32>
    tpu.vector_store %arg9[%349, %c0_69, %c0_70], %352 {strides = array<i32>} : memref<8x8x32xf32, #tpu.memory_space<vmem>>, vector<1x8x32xf32>,
    %c8_i32 = arith.constant 8 : i32
    %c0_71 = arith.constant 0 : index
    %c0_72 = arith.constant 0 : index
    %c0_73 = arith.constant 0 : index
    %353 = vector.load %arg9[%c0_71, %c0_72, %c0_73] : memref<8x8x32xf32, #tpu.memory_space<vmem>>, vector<8x8x32xf32>
    %c0_74 = arith.constant 0 : index
    %c0_75 = arith.constant 0 : index
    %354 = vector.load %arg6[%c0_74, %c0_75] : memref<1x32xf32, #tpu.memory_space<vmem>>, vector<1x32xf32>
    %c0_76 = arith.constant 0 : index
    %c0_77 = arith.constant 0 : index
    %355 = vector.load %arg7[%c0_76, %c0_77] : memref<1x1xf32, #tpu.memory_space<vmem>>, vector<1x1xf32>
    %356 = vector.shape_cast %354 : vector<1x32xf32> to vector<1x1x32xf32>
    %357 = vector.broadcast %356 : vector<1x1x32xf32> to vector<8x8x32xf32>
    %358 = arith.mulf %353, %357 : vector<8x8x32xf32>
    %cst_78 = arith.constant dense<0.000000e+00> : vector<8x8xf32>
    %359 = vector.multi_reduction <add>, %358, %cst_78 [2] : vector<8x8x32xf32> to vector<8x8xf32>
    %360 = vector.shape_cast %359 : vector<8x8xf32> to vector<8x8x1xf32>
    %361 = vector.shape_cast %355 : vector<1x1xf32> to vector<1x1x1xf32>
    %362 = vector.broadcast %361 : vector<1x1x1xf32> to vector<8x8x1xf32>
    %363 = arith.addf %360, %362 : vector<8x8x1xf32>
    %364 = arith.negf %363 : vector<8x8x1xf32>
    %365 = math.exp %364 : vector<8x8x1xf32>
    %cst_79 = arith.constant 1.000000e+00 : f32
    %366 = vector.broadcast %cst_79 : f32 to vector<8x8x1xf32>
    %367 = arith.addf %366, %365 : vector<8x8x1xf32>
    %368 = arith.divf %366, %367 : vector<8x8x1xf32>
    %c0_80 = arith.constant 0 : index
    %c0_81 = arith.constant 0 : index
    %c0_82 = arith.constant 0 : index
    %369 = vector.load %arg8[%c0_80, %c0_81, %c0_82] : memref<8x8x1xf32, #tpu.memory_space<vmem>>, vector<8x8x1xf32>
    tpu.vector_store %arg8[%c0_80, %c0_81, %c0_82], %368 {strides = array<i32>} : memref<8x8x1xf32, #tpu.memory_space<vmem>>, vector<8x8x1xf32>,
    return
  }
  func.func @transform_0(%arg0: i32) -> (i32, i32, i32) {
    %c0_i32 = arith.constant 0 : i32
    %c0_i32_0 = arith.constant 0 : i32
    %c0_i32_1 = arith.constant 0 : i32
    %c0_i32_2 = arith.constant 0 : i32
    return %c0_i32, %c0_i32_0, %c0_i32_1 : i32, i32, i32
  }
  func.func @transform_1(%arg0: i32) -> (i32, i32) {
    %c0_i32 = arith.constant 0 : i32
    %c0_i32_0 = arith.constant 0 : i32
    %c0_i32_1 = arith.constant 0 : i32
    return %c0_i32, %c0_i32_0 : i32, i32
  }
  func.func @transform_2(%arg0: i32) -> (i32, i32) {
    %c0_i32 = arith.constant 0 : i32
    %c0_i32_0 = arith.constant 0 : i32
    %c0_i32_1 = arith.constant 0 : i32
    return %c0_i32, %c0_i32_0 : i32, i32
  }
  func.func @transform_3(%arg0: i32) -> (i32, i32) {
    %c0_i32 = arith.constant 0 : i32
    %c0_i32_0 = arith.constant 0 : i32
    %c0_i32_1 = arith.constant 0 : i32
    return %c0_i32, %c0_i32_0 : i32, i32
  }
  func.func @transform_4(%arg0: i32) -> (i32, i32) {
    %c0_i32 = arith.constant 0 : i32
    %c0_i32_0 = arith.constant 0 : i32
    %c0_i32_1 = arith.constant 0 : i32
    return %c0_i32, %c0_i32_0 : i32, i32
  }
  func.func @transform_5(%arg0: i32) -> (i32, i32) {
    %c0_i32 = arith.constant 0 : i32
    %c0_i32_0 = arith.constant 0 : i32
    %c0_i32_1 = arith.constant 0 : i32
    return %c0_i32, %c0_i32_0 : i32, i32
  }
  func.func @transform_6(%arg0: i32) -> (i32, i32) {
    %c0_i32 = arith.constant 0 : i32
    %c0_i32_0 = arith.constant 0 : i32
    %c0_i32_1 = arith.constant 0 : i32
    return %c0_i32, %c0_i32_0 : i32, i32
  }
  func.func @transform_7(%arg0: i32) -> (i32, i32, i32) {
    %c0_i32 = arith.constant 0 : i32
    %c0_i32_0 = arith.constant 0 : i32
    %c0_i32_1 = arith.constant 0 : i32
    %c0_i32_2 = arith.constant 0 : i32
    return %c0_i32, %c0_i32_0, %c0_i32_1 : i32, i32, i32
  }
}

</mosaic_0001>

<bundles_post_ra>
// kernel: tpu_custom_call.1
= control target key start
LH: loop header
LB: loop body
LE: loop exit
PB: predicated region body
PF: predicated region fallthrough
CT: control target
= control target key end

     0   :  { %v2635_v0 = vmov 0.0|0.0   ;;  %vm2636_vm0 = vmmov 0   ;;  %v2637_v4 = vmov 0.0   ;;  %vm56_vm1 = vcmask 31744   ;;  %s2638_s14 = smov 64   ;;  %s2639_s15 = smov 32   ;;  %s3196_s1 = inlined_call_operand.vmem [shape: f32[36,128], index: 1, kind: input, shape index: {}]   ;;  %s3197_s0 = inlined_call_operand.vmem [shape: f32[8,8,4], index: 0, kind: input, shape index: {}]   ;;  %s3198_s2 = inlined_call_operand.vmem [shape: f32[1,128], index: 2, kind: input, shape index: {}]   ;;  %s3199_s3 = inlined_call_operand.vmem [shape: f32[64,128], index: 3, kind: input, shape index: {}]   ;;  %s3200_s4 = inlined_call_operand.vmem [shape: f32[1,128], index: 4, kind: input, shape index: {}]   ;;  %s3201_s5 = inlined_call_operand.vmem [shape: f32[1,32], index: 5, kind: input, shape index: {}]   ;;  %s3202_s6 = inlined_call_operand.<no memory space> [shape: f32[1,1], index: 6, kind: input, shape index: {}]   ;;  %s3203_s7 = inlined_call_operand.vmem [shape: f32[8,8,1], index: 7, kind: output, shape index: {}]  }
   0x1   :  { %2325 = vmatprep.subr.bf16.mxu0 %v2635_v0  ;;  %v28_v1 = vld [vmem:[%s3196_s1] sm:$0xff]  ;;  %v29_v2 = vld [vmem:[%s3196_s1 + $0x8] sm:$0xff]  ;;  %v30_v3 = vld [vmem:[%s3196_s1 + $0x10] sm:$0xff]  ;;  %2079 = vmatprep.mubr.msk.f32.mxu0 %vm2636_vm0, %v2637_v4  ;;  %vm62_vm2 = vcmask 1043456   ;;  %vm58_vm3 = vcmask 293888   ;;  %s2640_s8 = smov 36  }
   0x2   :  { %v2693_v5 = vpack.c.bf16 %v29_v2, %v28_v1  ;;  %v31_v6 = vld [vmem:[%s3196_s1 + $0x18] sm:$0xff]  ;;  %2331 = vmatprep.subr.bf16.mxu1 %v2635_v0  ;;  %2098 = vmatprep.mubr.msk.f32.mxu1 %vm2636_vm0, %v2637_v4  ;;  %v55_v8 = vld [vmem:[%s3197_s0] sm:$0xff]  ;;  %v34_v26 = vld [vmem:[%s3199_s3 + $0x8] sm:$0xff]  ;;  %vm164_vm4 = vcmask 261120   ;;  %vm166_vm5 = vcmask 523264   ;;  %vm1877_vm6 = vcmask 7168  }
   0x3   :  { %v2702_v7 = vpack.c.bf16 %v31_v6, %v30_v3  ;;  %v2713_v9 = vld [vmem:[%s3196_s1 + $0x20] sm:$0xf]  ;;  %v57_v10 = vsel %vm56_vm1, %v55_v8, 0.0  ;;  %v35_v27 = vld [vmem:[%s3199_s3 + $0x10] sm:$0xff]  ;;  %v36_v29 = vld [vmem:[%s3199_s3 + $0x18] sm:$0xff] }
   0x4   :  { %2327 = vmatpush3.bf16.msra.mxu0 %v2693_v5  ;;  %v2732_v11 = vld [vmem:[%s3198_s2] ss:$0 sm:$0xff]  ;;  %v2755_v30 = vpack.c.bf16 %v36_v29, %v35_v27  ;;  %v38_v32 = vld [vmem:[%s3199_s3 + $0x28] sm:$0xff]  ;;  %v39_v34 = vld [vmem:[%s3199_s3 + $0x30] sm:$0xff] }
   0x5   :  { %2328 = vmatprep.subr.bf16.mxu0 %v2635_v0  ;;  %v33_v25 = vld [vmem:[%s3199_s3] sm:$0xff]  ;;  %v40_v35 = vld [vmem:[%s3199_s3 + $0x38] sm:$0xff]  ;;  %v1897_v40 = vld [vmem:[%s3197_s0 + $0x8] sm:$0xff] }
   0x6   :  { %v2749_v28 = vpack.c.bf16 %v34_v26, %v33_v25  ;;  %v37_v31 = vld [vmem:[%s3199_s3 + $0x20] sm:$0xff]  ;;  %v2776_v37 = vpack.c.bf16 %v40_v35, %v39_v34 }
   0x7   :  { %v2765_v33 = vpack.c.bf16 %v38_v32, %v37_v31  ;;  %v2812_v45 = vld [vmem:[%s3200_s4] ss:$0 sm:$0xff] }
   0x8   :  { %2330 = vmatpush3.bf16.msra.mxu0 %v2702_v7  ;;  %2333 = vmatpush3.bf16.msra.mxu1 %v2749_v28 }
   0x9   :  { %2077 = vmatprep.subr.mxu0 %v2637_v4  ;;  %2334 = vmatprep.subr.bf16.mxu1 %v2635_v0 }
   0xc   :  { %2078 = vmatpush3.msk.msra.mxu0 %vm62_vm2, %v2713_v9  ;;  %2336 = vmatpush3.bf16.msra.mxu1 %v2755_v30 }
   0xd   :  { %2080 = vmatmul.mubr.msk.f32.vlgmr.msra.gmra.mrb[0].mxu0 %vm58_vm3, %v57_v10  ;;  %2343 = vmatprep.subr.bf16.mxu0 %v2635_v0 }
   0xe   :  { %2345 = vmatpush3.bf16.msra.mxu0 %v2693_v5  ;;  %2111 = vmatprep.mubr.msk.f32.mxu0 %vm2636_vm0, %v2637_v4 }
   0xf   :  { %2346 = vmatprep.subr.bf16.mxu0 %v2635_v0  ;;  %2337 = vmatprep.subr.bf16.mxu1 %v2635_v0 }
  0x10   :  { %2339 = vmatpush3.bf16.msra.mxu1 %v2765_v33 }
  0x11   :  { %2340 = vmatprep.subr.bf16.mxu1 %v2635_v0 }
  0x12   :  { %2348 = vmatpush3.bf16.msra.mxu0 %v2702_v7 }
  0x13   :  { %2109 = vmatprep.subr.mxu0 %v2637_v4 }
  0x14   :  { %2342 = vmatpush3.bf16.msra.mxu1 %v2776_v37 }
  0x15   :  { %2349 = vmatprep.subr.bf16.mxu1 %v2635_v0 }
  0x16   :  { %2110 = vmatpush3.msk.msra.mxu0 %vm62_vm2, %v2713_v9 }
  0x17   :  { %2361 = vmatprep.subr.bf16.mxu0 %v2635_v0 }
  0xe0   :  { %v132_v12 = vpop.f32.mrb[0].mxu0 }
  0xe1   :  { %v133_v13 = vadd.f32 %v2732_v11, %v132_v12  ;;  %v2081_v14 = vpop.f32.mrb[1].mxu0 }
  0xe3   :  { %2475 = vtanh.f32 %v133_v13  ;;  %v1894_v16 = vmul.f32 -1.442695, %v133_v13 }
  0xe5   :  { %2477 = vpow2.f32 %v1894_v16 }
  0xed   :  { %v2476_v15 = vpop.eup %2475 }
  0xee   :  { %145 = vrot.lane.b32.xlu0 %v2476_v15, %s2638_s14 }
  0xef   :  { %v2478_v17 = vpop.eup %2477 }
  0xf0   :  { %v139_v18 = vadd.f32 1.0, %v2478_v17 }
  0xf2   :  { %2479 = vrcp.f32 %v139_v18 }
  0xfc   :  { %v2480_v19 = vpop.eup %2479 }
  0xfd   :  { %v143_v22 = vmul.f32 0.0, %v2480_v19 }
 0x160   :  { %v146_v20 = vpop.permute.xlu0 %145 }
 0x161   :  { %v148_v21 = vmul.f32 %v2480_v19, %v146_v20 }
 0x163   :  { %150 = vrot.lane.b32.xlu0 %v148_v21, %s2639_s15 }
 0x1d5   :  { %v151_v23 = vpop.permute.xlu0 %150 }
 0x1d6   :  { %v2737_v24 = vadd.f32 %v151_v23, %v143_v22  ;;  %v1903_v23 = vld [vmem:[%s3197_s0 + $0x10] sm:$0xff] }
 0x1d8   :  { %2481 = vtanh.f32 %v2737_v24 }
 0x1e2   :  { %v2482_v36 = vpop.eup %2481 }
 0x1e3   :  { %156 = vrot.lane.b32.xlu1 %v2482_v36, %s2638_s14 }
 0x255   :  { %v157_v38 = vpop.permute.xlu1 %156 }
 0x256   :  { %v159_v39 = vmul.f32 %v2480_v19, %v157_v38 }
 0x258   :  { %271 = vrot.lane.b32.xlu0 %v159_v39, %s2640_s8  ;;  %161 = vrot.lane.b32.xlu1 %v159_v39, %s2639_s15 }
 0x2ca   :  { %v272_v41 = vpop.permute.xlu0 %271  ;;  %v162_v42 = vpop.permute.xlu1 %161 }
 0x2cb   :  { %v274_v43 = vsel %vm56_vm1, %v1897_v40, %v272_v41  ;;  %v165_v44 = vsel %vm164_vm4, %v162_v42, 0.0 }
 0x2cc   :  { %2099 = vmatmul.mubr.msk.f32.vlgmr.msra.gmra.mrb[0].mxu1 %vm166_vm5, %v165_v44  ;;  %2112 = vmatmul.mubr.msk.f32.vlgmr.msra.gmra.mrb[2].mxu0 %vm58_vm3, %v274_v43 }
 0x2cd   :  { %2351 = vmatpush3.bf16.msra.mxu1 %v2749_v28  ;;  %2363 = vmatpush3.bf16.msra.mxu0 %v2693_v5 }
 0x2ce   :  { %2352 = vmatprep.subr.bf16.mxu1 %v2635_v0  ;;  %2364 = vmatprep.subr.bf16.mxu0 %v2635_v0 }
 0x2cf   :  { %2130 = vmatprep.mubr.msk.f32.mxu1 %vm2636_vm0, %v2637_v4  ;;  %2143 = vmatprep.mubr.msk.f32.mxu0 %vm2636_vm0, %v2637_v4 }
 0x2d1   :  { %2354 = vmatpush3.bf16.msra.mxu1 %v2755_v30  ;;  %2366 = vmatpush3.bf16.msra.mxu0 %v2702_v7 }
 0x2d2   :  { %2355 = vmatprep.subr.bf16.mxu1 %v2635_v0  ;;  %2141 = vmatprep.subr.mxu0 %v2637_v4 }
 0x2d5   :  { %2357 = vmatpush3.bf16.msra.mxu1 %v2765_v33  ;;  %2142 = vmatpush3.msk.msra.mxu0 %vm62_vm2, %v2713_v9 }
 0x2d6   :  { %2358 = vmatprep.subr.bf16.mxu1 %v2635_v0  ;;  %2367 = vmatprep.subr.bf16.mxu0 %v2635_v0 }
 0x2d9   :  { %2360 = vmatpush3.bf16.msra.mxu1 %v2776_v37 }
 0x2da   :  { %2385 = vmatprep.subr.bf16.mxu1 %v2635_v0 }
 0x39f   :  { %v236_v46 = vpop.f32.mrb[0].mxu1  ;;  %v344_v47 = vpop.f32.mrb[2].mxu0 }
 0x3a0   :  { %v237_v48 = vadd.f32 %v2812_v45, %v236_v46  ;;  %v345_v49 = vadd.f32 %v2732_v11, %v344_v47  ;;  %v2100_v50 = vpop.f32.mrb[1].mxu1  ;;  %v2113_v51 = vpop.f32.mrb[3].mxu0 }
 0x3a2   :  { %2483 = vtanh.f32 %v237_v48  ;;  %v1896_v54 = vmul.f32 -1.442695, %v237_v48  ;;  %v1900_v55 = vmul.f32 -1.442695, %v345_v49 }
 0x3a3   :  { %2485 = vtanh.f32 %v345_v49 }
 0x3a4   :  { %2487 = vpow2.f32 %v1896_v54 }
 0x3a5   :  { %2489 = vpow2.f32 %v1900_v55 }
 0x3ac   :  { %v2484_v52 = vpop.eup %2483 }
 0x3ad   :  { %v2486_v53 = vpop.eup %2485  ;;  %249 = vrot.lane.b32.xlu1 %v2484_v52, %s2638_s14 }
 0x3ae   :  { %357 = vrot.lane.b32.xlu0 %v2486_v53, %s2638_s14  ;;  %v2488_v56 = vpop.eup %2487 }
 0x3af   :  { %v2490_v57 = vpop.eup %2489  ;;  %v243_v58 = vadd.f32 1.0, %v2488_v56 }
 0x3b0   :  { %v351_v59 = vadd.f32 1.0, %v2490_v57 }
 0x3b1   :  { %2491 = vrcp.f32 %v243_v58 }
 0x3b2   :  { %2493 = vrcp.f32 %v351_v59 }
 0x3bb   :  { %v2492_v60 = vpop.eup %2491 }
 0x3bc   :  { %v2494_v62 = vpop.eup %2493  ;;  %v247_v3 = vmul.f32 0.0, %v2492_v60 }
 0x3bd   :  { %v355_v8 = vmul.f32 %v2494_v62, %v2737_v24 }
 0x41f   :  { %v250_v61 = vpop.permute.xlu1 %249 }
 0x420   :  { %v252_v63 = vmul.f32 %v2492_v60, %v250_v61  ;;  %v358_v1 = vpop.permute.xlu0 %357 }
 0x421   :  { %v360_v2 = vmul.f32 %v2494_v62, %v358_v1 }
 0x422   :  { %254 = vrot.lane.b32.xlu1 %v252_v63, %s2639_s15 }
 0x423   :  { %362 = vrot.lane.b32.xlu0 %v360_v2, %s2639_s15 }
 0x494   :  { %v255_v6 = vpop.permute.xlu1 %254 }
 0x495   :  { %v2821_v10 = vadd.f32 %v255_v6, %v247_v3  ;;  %v363_v12 = vpop.permute.xlu0 %362  ;;  %v1909_v3 = vld [vmem:[%s3197_s0 + $0x18] sm:$0xff] }
 0x496   :  { %v2823_v13 = vadd.f32 %v363_v12, %v355_v8 }
 0x497   :  { %2495 = vtanh.f32 %v2821_v10 }
 0x498   :  { %2497 = vtanh.f32 %v2823_v13 }
 0x4a1   :  { %v2496_v14 = vpop.eup %2495 }
 0x4a2   :  { %v2498_v15 = vpop.eup %2497  ;;  %260 = vrot.lane.b32.xlu1 %v2496_v14, %s2638_s14 }
 0x4a3   :  { %368 = vrot.lane.b32.xlu0 %v2498_v15, %s2638_s14 }
 0x514   :  { %v261_v16 = vpop.permute.xlu1 %260 }
 0x515   :  { %v2829_v17 = vmul.f32 %v2492_v60, %v261_v16  ;;  %v369_v18 = vpop.permute.xlu0 %368 }
 0x516   :  { %v371_v19 = vmul.f32 %v2494_v62, %v369_v18 }
 0x517   :  { %376 = vrot.lane.b32.xlu0 %v2829_v17, %s2638_s14 }
 0x518   :  { %373 = vrot.lane.b32.xlu1 %v371_v19, %s2639_s15 }
 0x51c   :  { %485 = vrot.lane.b32.xlu1 %v371_v19, %s2640_s8 }
 0x589   :  { %v377_v20 = vpop.permute.xlu0 %376 }
 0x58a   :  { %v374_v21 = vpop.permute.xlu1 %373 }
 0x58b   :  { %v379_v22 = vsel %vm164_vm4, %v374_v21, %v377_v20 }
 0x58c   :  { %2131 = vmatmul.mubr.msk.f32.vlgmr.msra.gmra.mrb[2].mxu1 %vm166_vm5, %v379_v22 }
 0x58d   :  { %2387 = vmatpush3.bf16.msra.mxu1 %v2749_v28  ;;  %2194 = vmatprep.mubr.msk.f32.mxu1 %vm2636_vm0, %v2637_v4 }
 0x58e   :  { %v486_v24 = vpop.permute.xlu1 %485  ;;  %2388 = vmatprep.subr.bf16.mxu1 %v2635_v0 }
 0x58f   :  { %v488_v25 = vsel %vm56_vm1, %v1903_v23, %v486_v24 }
 0x590   :  { %2144 = vmatmul.mubr.msk.f32.vlgmr.msra.gmra.mrb[4].mxu0 %vm58_vm3, %v488_v25 }
 0x591   :  { %2369 = vmatpush3.bf16.msra.mxu0 %v2749_v28  ;;  %2162 = vmatprep.mubr.msk.f32.mxu0 %vm2636_vm0, %v2637_v4 }
 0x592   :  { %2370 = vmatprep.subr.bf16.mxu0 %v2635_v0  ;;  %2390 = vmatpush3.bf16.msra.mxu1 %v2755_v30 }
 0x593   :  { %2391 = vmatprep.subr.bf16.mxu1 %v2635_v0 }
 0x595   :  { %2372 = vmatpush3.bf16.msra.mxu0 %v2755_v30 }
 0x596   :  { %2373 = vmatprep.subr.bf16.mxu0 %v2635_v0  ;;  %2393 = vmatpush3.bf16.msra.mxu1 %v2765_v33 }
 0x597   :  { %2394 = vmatprep.subr.bf16.mxu1 %v2635_v0 }
 0x599   :  { %2375 = vmatpush3.bf16.msra.mxu0 %v2765_v33 }
 0x59a   :  { %2376 = vmatprep.subr.bf16.mxu0 %v2635_v0  ;;  %2396 = vmatpush3.bf16.msra.mxu1 %v2776_v37 }
 0x59b   :  { %2415 = vmatprep.subr.bf16.mxu1 %v2635_v0 }
 0x59d   :  { %2378 = vmatpush3.bf16.msra.mxu0 %v2776_v37 }
 0x59e   :  { %2379 = vmatprep.subr.bf16.mxu0 %v2635_v0 }
 0x65f   :  { %v449_v26 = vpop.f32.mrb[2].mxu1 }
 0x660   :  { %v450_v27 = vadd.f32 %v2812_v45, %v449_v26  ;;  %v2132_v29 = vpop.f32.mrb[3].mxu1 }
 0x662   :  { %2499 = vtanh.f32 %v450_v27  ;;  %v1902_v38 = vmul.f32 -1.442695, %v450_v27 }
 0x663   :  { %v558_v31 = vpop.f32.mrb[4].mxu0 }
 0x664   :  { %v559_v32 = vadd.f32 %v2732_v11, %v558_v31  ;;  %v2145_v34 = vpop.f32.mrb[5].mxu0 }
 0x666   :  { %2501 = vtanh.f32 %v559_v32  ;;  %v1906_v39 = vmul.f32 -1.442695, %v559_v32 }
 0x667   :  { %2503 = vpow2.f32 %v1902_v38 }
 0x668   :  { %2505 = vpow2.f32 %v1906_v39 }
 0x66c   :  { %v2500_v35 = vpop.eup %2499 }
 0x66d   :  { %462 = vrot.lane.b32.xlu0 %v2500_v35, %s2638_s14 }
 0x670   :  { %v2502_v36 = vpop.eup %2501 }
 0x671   :  { %571 = vrot.lane.b32.xlu1 %v2502_v36, %s2638_s14  ;;  %v2504_v40 = vpop.eup %2503 }
 0x672   :  { %v456_v41 = vadd.f32 1.0, %v2504_v40  ;;  %v2506_v42 = vpop.eup %2505 }
 0x673   :  { %v565_v43 = vadd.f32 1.0, %v2506_v42 }
 0x674   :  { %2507 = vrcp.f32 %v456_v41 }
 0x675   :  { %2509 = vrcp.f32 %v565_v43 }
 0x67e   :  { %v2508_v44 = vpop.eup %2507 }
 0x67f   :  { %v2510_v48 = vpop.eup %2509  ;;  %v460_v51 = vmul.f32 %v2508_v44, %v2821_v10 }
 0x680   :  { %v569_v54 = vmul.f32 %v2510_v48, %v2823_v13 }
 0x6df   :  { %v463_v46 = vpop.permute.xlu0 %462 }
 0x6e0   :  { %v465_v47 = vmul.f32 %v2508_v44, %v463_v46 }
 0x6e2   :  { %467 = vrot.lane.b32.xlu0 %v465_v47, %s2639_s15 }
 0x6e3   :  { %v572_v49 = vpop.permute.xlu1 %571 }
 0x6e4   :  { %v574_v50 = vmul.f32 %v2510_v48, %v572_v49 }
 0x6e6   :  { %576 = vrot.lane.b32.xlu1 %v574_v50, %s2639_s15 }
 0x754   :  { %v468_v52 = vpop.permute.xlu0 %467 }
 0x755   :  { %v2869_v53 = vadd.f32 %v468_v52, %v460_v51  ;;  %v1915_v52 = vld [vmem:[%s3197_s0 + $0x20] sm:$0xff] }
 0x757   :  { %2511 = vtanh.f32 %v2869_v53 }
 0x758   :  { %v577_v55 = vpop.permute.xlu1 %576 }
 0x759   :  { %v2873_v56 = vadd.f32 %v577_v55, %v569_v54 }
 0x75b   :  { %2513 = vtanh.f32 %v2873_v56 }
 0x761   :  { %v2512_v57 = vpop.eup %2511 }
 0x762   :  { %473 = vrot.lane.b32.xlu0 %v2512_v57, %s2638_s14 }
 0x765   :  { %v2514_v58 = vpop.eup %2513 }
 0x766   :  { %582 = vrot.lane.b32.xlu1 %v2514_v58, %s2638_s14 }
 0x7d4   :  { %v474_v59 = vpop.permute.xlu0 %473 }
 0x7d5   :  { %v2878_v60 = vmul.f32 %v2508_v44, %v474_v59 }
 0x7d7   :  { %590 = vrot.lane.b32.xlu1 %v2878_v60, %s2638_s14 }
 0x7d8   :  { %v583_v61 = vpop.permute.xlu1 %582 }
 0x7d9   :  { %v585_v62 = vmul.f32 %v2510_v48, %v583_v61 }
 0x7db   :  { %587 = vrot.lane.b32.xlu0 %v585_v62, %s2639_s15 }
 0x7df   :  { %699 = vrot.lane.b32.xlu0 %v585_v62, %s2640_s8 }
 0x849   :  { %v591_v63 = vpop.permute.xlu1 %590 }
 0x84d   :  { %v588_v1 = vpop.permute.xlu0 %587 }
 0x84e   :  { %v593_v2 = vsel %vm164_vm4, %v588_v1, %v591_v63 }
 0x84f   :  { %2163 = vmatmul.mubr.msk.f32.vlgmr.msra.gmra.mrb[6].mxu0 %vm166_vm5, %v593_v2 }
 0x850   :  { %2381 = vmatpush3.bf16.msra.mxu0 %v2693_v5  ;;  %2175 = vmatprep.mubr.msk.f32.mxu0 %vm2636_vm0, %v2637_v4 }
 0x851   :  { %2382 = vmatprep.subr.bf16.mxu0 %v2635_v0  ;;  %v700_v6 = vpop.permute.xlu0 %699 }
 0x852   :  { %v702_v8 = vsel %vm56_vm1, %v1909_v3, %v700_v6 }
 0x854   :  { %2384 = vmatpush3.bf16.msra.mxu0 %v2702_v7 }
 0x855   :  { %2173 = vmatprep.subr.mxu0 %v2637_v4 }
 0x858   :  { %2174 = vmatpush3.msk.msra.mxu0 %vm62_vm2, %v2713_v9 }
 0x859   :  { %2176 = vmatmul.mubr.msk.f32.vlgmr.msra.gmra.mrb[8].mxu0 %vm58_vm3, %v702_v8  ;;  %2397 = vmatprep.subr.bf16.mxu0 %v2635_v0 }
 0x85a   :  { %2399 = vmatpush3.bf16.msra.mxu0 %v2693_v5  ;;  %2207 = vmatprep.mubr.msk.f32.mxu0 %vm2636_vm0, %v2637_v4 }
 0x85b   :  { %2400 = vmatprep.subr.bf16.mxu0 %v2635_v0 }
 0x85e   :  { %2402 = vmatpush3.bf16.msra.mxu0 %v2702_v7 }
 0x85f   :  { %2205 = vmatprep.subr.mxu0 %v2637_v4 }
 0x862   :  { %2206 = vmatpush3.msk.msra.mxu0 %vm62_vm2, %v2713_v9 }
 0x863   :  { %2403 = vmatprep.subr.bf16.mxu0 %v2635_v0 }
 0x922   :  { %v663_v10 = vpop.f32.mrb[6].mxu0 }
 0x923   :  { %v664_v12 = vadd.f32 %v2812_v45, %v663_v10  ;;  %v2164_v13 = vpop.f32.mrb[7].mxu0 }
 0x925   :  { %2515 = vtanh.f32 %v664_v12  ;;  %v1908_v20 = vmul.f32 -1.442695, %v664_v12 }
 0x92c   :  { %v772_v14 = vpop.f32.mrb[8].mxu0 }
 0x92d   :  { %v773_v15 = vadd.f32 %v2732_v11, %v772_v14  ;;  %v2177_v16 = vpop.f32.mrb[9].mxu0 }
 0x92f   :  { %v2516_v18 = vpop.eup %2515  ;;  %2517 = vtanh.f32 %v773_v15  ;;  %v1912_v21 = vmul.f32 -1.442695, %v773_v15 }
 0x930   :  { %676 = vrot.lane.b32.xlu1 %v2516_v18, %s2638_s14  ;;  %2519 = vpow2.f32 %v1908_v20 }
 0x931   :  { %2521 = vpow2.f32 %v1912_v21 }
 0x939   :  { %v2518_v19 = vpop.eup %2517 }
 0x93a   :  { %785 = vrot.lane.b32.xlu0 %v2518_v19, %s2638_s14  ;;  %v2520_v22 = vpop.eup %2519 }
 0x93b   :  { %v670_v23 = vadd.f32 1.0, %v2520_v22  ;;  %v2522_v24 = vpop.eup %2521 }
 0x93c   :  { %v779_v25 = vadd.f32 1.0, %v2522_v24 }
 0x93d   :  { %2523 = vrcp.f32 %v670_v23 }
 0x93e   :  { %2525 = vrcp.f32 %v779_v25 }
 0x947   :  { %v2524_v26 = vpop.eup %2523 }
 0x948   :  { %v2526_v31 = vpop.eup %2525  ;;  %v674_v35 = vmul.f32 %v2524_v26, %v2869_v53 }
 0x949   :  { %v783_v39 = vmul.f32 %v2526_v31, %v2873_v56 }
 0x9a2   :  { %v677_v27 = vpop.permute.xlu1 %676 }
 0x9a3   :  { %v679_v29 = vmul.f32 %v2524_v26, %v677_v27 }
 0x9a5   :  { %681 = vrot.lane.b32.xlu1 %v679_v29, %s2639_s15 }
 0x9ac   :  { %v786_v32 = vpop.permute.xlu0 %785 }
 0x9ad   :  { %v788_v34 = vmul.f32 %v2526_v31, %v786_v32 }
 0x9af   :  { %790 = vrot.lane.b32.xlu0 %v788_v34, %s2639_s15 }
 0xa17   :  { %v682_v36 = vpop.permute.xlu1 %681 }
 0xa18   :  { %v2916_v38 = vadd.f32 %v682_v36, %v674_v35 }
 0xa1a   :  { %2527 = vtanh.f32 %v2916_v38 }
 0xa21   :  { %v791_v40 = vpop.permute.xlu0 %790 }
 0xa22   :  { %v2920_v41 = vadd.f32 %v791_v40, %v783_v39 }
 0xa24   :  { %v2528_v42 = vpop.eup %2527  ;;  %2529 = vtanh.f32 %v2920_v41 }
 0xa25   :  { %687 = vrot.lane.b32.xlu1 %v2528_v42, %s2638_s14 }
 0xa2e   :  { %v2530_v43 = vpop.eup %2529 }
 0xa2f   :  { %796 = vrot.lane.b32.xlu0 %v2530_v43, %s2638_s14 }
 0xa97   :  { %v688_v44 = vpop.permute.xlu1 %687 }
 0xa98   :  { %v2925_v46 = vmul.f32 %v2524_v26, %v688_v44 }
 0xa9a   :  { %804 = vrot.lane.b32.xlu0 %v2925_v46, %s2638_s14 }
 0xaa1   :  { %v797_v47 = vpop.permute.xlu0 %796 }
 0xaa2   :  { %v799_v48 = vmul.f32 %v2526_v31, %v797_v47 }
 0xaa4   :  { %801 = vrot.lane.b32.xlu1 %v799_v48, %s2639_s15 }
 0xaa8   :  { %913 = vrot.lane.b32.xlu1 %v799_v48, %s2640_s8 }
 0xb0c   :  { %v805_v49 = vpop.permute.xlu0 %804 }
 0xb16   :  { %v802_v50 = vpop.permute.xlu1 %801 }
 0xb17   :  { %v807_v51 = vsel %vm164_vm4, %v802_v50, %v805_v49 }
 0xb18   :  { %2195 = vmatmul.mubr.msk.f32.vlgmr.msra.gmra.mrb[4].mxu1 %vm166_vm5, %v807_v51 }
 0xb19   :  { %2417 = vmatpush3.bf16.msra.mxu1 %v2693_v5  ;;  %2239 = vmatprep.mubr.msk.f32.mxu1 %vm2636_vm0, %v2637_v4 }
 0xb1a   :  { %v914_v53 = vpop.permute.xlu1 %913  ;;  %2418 = vmatprep.subr.bf16.mxu1 %v2635_v0 }
 0xb1b   :  { %v916_v54 = vsel %vm56_vm1, %v1915_v52, %v914_v53 }
 0xb1c   :  { %2208 = vmatmul.mubr.msk.f32.vlgmr.msra.gmra.mrb[10].mxu0 %vm58_vm3, %v916_v54 }
 0xb1d   :  { %2405 = vmatpush3.bf16.msra.mxu0 %v2749_v28  ;;  %2226 = vmatprep.mubr.msk.f32.mxu0 %vm2636_vm0, %v2637_v4 }
 0xb1e   :  { %2406 = vmatprep.subr.bf16.mxu0 %v2635_v0  ;;  %2420 = vmatpush3.bf16.msra.mxu1 %v2702_v7 }
 0xb1f   :  { %2237 = vmatprep.subr.mxu1 %v2637_v4 }
 0xb21   :  { %2408 = vmatpush3.bf16.msra.mxu0 %v2755_v30 }
 0xb22   :  { %2409 = vmatprep.subr.bf16.mxu0 %v2635_v0  ;;  %2238 = vmatpush3.msk.msra.mxu1 %vm62_vm2, %v2713_v9 }
 0xb23   :  { %2421 = vmatprep.subr.bf16.mxu1 %v2635_v0 }
 0xb25   :  { %2411 = vmatpush3.bf16.msra.mxu0 %v2765_v33 }
 0xb26   :  { %2412 = vmatprep.subr.bf16.mxu0 %v2635_v0 }
 0xb29   :  { %2414 = vmatpush3.bf16.msra.mxu0 %v2776_v37 }
 0xb2a   :  { %2433 = vmatprep.subr.bf16.mxu0 %v2635_v0 }
 0xbeb   :  { %v877_v55 = vpop.f32.mrb[4].mxu1 }
 0xbec   :  { %v878_v56 = vadd.f32 %v2812_v45, %v877_v55  ;;  %v2196_v57 = vpop.f32.mrb[5].mxu1 }
 0xbee   :  { %2531 = vtanh.f32 %v878_v56  ;;  %v1914_v1 = vmul.f32 -1.442695, %v878_v56 }
 0xbef   :  { %v986_v58 = vpop.f32.mrb[10].mxu0 }
 0xbf0   :  { %v987_v59 = vadd.f32 %v2732_v11, %v986_v58  ;;  %v2209_v61 = vpop.f32.mrb[11].mxu0 }
 0xbf2   :  { %2533 = vtanh.f32 %v987_v59  ;;  %v1918_v2 = vmul.f32 -1.442695, %v987_v59 }
 0xbf3   :  { %2535 = vpow2.f32 %v1914_v1 }
 0xbf4   :  { %2537 = vpow2.f32 %v1918_v2 }
 0xbf8   :  { %v2532_v62 = vpop.eup %2531 }
 0xbf9   :  { %890 = vrot.lane.b32.xlu0 %v2532_v62, %s2638_s14 }
 0xbfc   :  { %v2534_v63 = vpop.eup %2533 }
 0xbfd   :  { %999 = vrot.lane.b32.xlu1 %v2534_v63, %s2638_s14  ;;  %v2536_v3 = vpop.eup %2535 }
 0xbfe   :  { %v884_v6 = vadd.f32 1.0, %v2536_v3  ;;  %v2538_v8 = vpop.eup %2537 }
 0xbff   :  { %v993_v10 = vadd.f32 1.0, %v2538_v8 }
 0xc00   :  { %2539 = vrcp.f32 %v884_v6 }
 0xc01   :  { %2541 = vrcp.f32 %v993_v10 }
 0xc0a   :  { %v2540_v12 = vpop.eup %2539 }
 0xc0b   :  { %v2542_v15 = vpop.eup %2541  ;;  %v888_v19 = vmul.f32 %v2540_v12, %v2916_v38  ;;  %v1921_v38 = vld [vmem:[%s3197_s0 + $0x28] sm:$0xff] }
 0xc0c   :  { %v997_v22 = vmul.f32 %v2542_v15, %v2920_v41 }
 0xc6b   :  { %v891_v13 = vpop.permute.xlu0 %890 }
 0xc6c   :  { %v893_v14 = vmul.f32 %v2540_v12, %v891_v13 }
 0xc6e   :  { %895 = vrot.lane.b32.xlu0 %v893_v14, %s2639_s15 }
 0xc6f   :  { %v1000_v16 = vpop.permute.xlu1 %999 }
 0xc70   :  { %v1002_v18 = vmul.f32 %v2542_v15, %v1000_v16 }
 0xc72   :  { %1004 = vrot.lane.b32.xlu1 %v1002_v18, %s2639_s15 }
 0xce0   :  { %v896_v20 = vpop.permute.xlu0 %895 }
 0xce1   :  { %v2964_v21 = vadd.f32 %v896_v20, %v888_v19 }
 0xce3   :  { %2543 = vtanh.f32 %v2964_v21 }
 0xce4   :  { %v1005_v23 = vpop.permute.xlu1 %1004 }
 0xce5   :  { %v2968_v24 = vadd.f32 %v1005_v23, %v997_v22  ;;  %v1927_v22 = vld [vmem:[%s3197_s0 + $0x30] sm:$0xff] }
 0xce7   :  { %2545 = vtanh.f32 %v2968_v24 }
 0xced   :  { %v2544_v25 = vpop.eup %2543 }
 0xcee   :  { %901 = vrot.lane.b32.xlu0 %v2544_v25, %s2638_s14 }
 0xcf1   :  { %v2546_v26 = vpop.eup %2545 }
 0xcf2   :  { %1010 = vrot.lane.b32.xlu1 %v2546_v26, %s2638_s14 }
 0xd60   :  { %v902_v27 = vpop.permute.xlu0 %901 }
 0xd61   :  { %v2973_v29 = vmul.f32 %v2540_v12, %v902_v27 }
 0xd63   :  { %1018 = vrot.lane.b32.xlu1 %v2973_v29, %s2638_s14 }
 0xd64   :  { %v1011_v31 = vpop.permute.xlu1 %1010 }
 0xd65   :  { %v1013_v32 = vmul.f32 %v2542_v15, %v1011_v31 }
 0xd67   :  { %1015 = vrot.lane.b32.xlu0 %v1013_v32, %s2639_s15 }
 0xd6b   :  { %1127 = vrot.lane.b32.xlu0 %v1013_v32, %s2640_s8 }
 0xdd5   :  { %v1019_v34 = vpop.permute.xlu1 %1018 }
 0xdd9   :  { %v1016_v35 = vpop.permute.xlu0 %1015 }
 0xdda   :  { %v1021_v36 = vsel %vm164_vm4, %v1016_v35, %v1019_v34 }
 0xddb   :  { %2227 = vmatmul.mubr.msk.f32.vlgmr.msra.gmra.mrb[12].mxu0 %vm166_vm5, %v1021_v36 }
 0xddc   :  { %2435 = vmatpush3.bf16.msra.mxu0 %v2693_v5  ;;  %2271 = vmatprep.mubr.msk.f32.mxu0 %vm2636_vm0, %v2637_v4 }
 0xddd   :  { %v1128_v39 = vpop.permute.xlu0 %1127  ;;  %2436 = vmatprep.subr.bf16.mxu0 %v2635_v0 }
 0xdde   :  { %v1130_v40 = vsel %vm56_vm1, %v1921_v38, %v1128_v39 }
 0xddf   :  { %2240 = vmatmul.mubr.msk.f32.vlgmr.msra.gmra.mrb[6].mxu1 %vm58_vm3, %v1130_v40 }
 0xde0   :  { %2423 = vmatpush3.bf16.msra.mxu1 %v2749_v28  ;;  %2258 = vmatprep.mubr.msk.f32.mxu1 %vm2636_vm0, %v2637_v4 }
 0xde1   :  { %2424 = vmatprep.subr.bf16.mxu1 %v2635_v0  ;;  %2438 = vmatpush3.bf16.msra.mxu0 %v2702_v7 }
 0xde2   :  { %2269 = vmatprep.subr.mxu0 %v2637_v4 }
 0xde4   :  { %2426 = vmatpush3.bf16.msra.mxu1 %v2755_v30 }
 0xde5   :  { %2427 = vmatprep.subr.bf16.mxu1 %v2635_v0  ;;  %2270 = vmatpush3.msk.msra.mxu0 %vm62_vm2, %v2713_v9 }
 0xde6   :  { %2439 = vmatprep.subr.bf16.mxu0 %v2635_v0 }
 0xde8   :  { %2429 = vmatpush3.bf16.msra.mxu1 %v2765_v33 }
 0xde9   :  { %2430 = vmatprep.subr.bf16.mxu1 %v2635_v0 }
 0xdec   :  { %2432 = vmatpush3.bf16.msra.mxu1 %v2776_v37 }
 0xded   :  { %2451 = vmatprep.subr.bf16.mxu1 %v2635_v0 }
 0xeae   :  { %v1091_v41 = vpop.f32.mrb[12].mxu0 }
 0xeaf   :  { %v1092_v42 = vadd.f32 %v2812_v45, %v1091_v41  ;;  %v2228_v43 = vpop.f32.mrb[13].mxu0 }
 0xeb1   :  { %2547 = vtanh.f32 %v1092_v42  ;;  %v1920_v51 = vmul.f32 -1.442695, %v1092_v42 }
 0xeb2   :  { %v1200_v44 = vpop.f32.mrb[6].mxu1 }
 0xeb3   :  { %v1201_v47 = vadd.f32 %v2732_v11, %v1200_v44  ;;  %v2241_v48 = vpop.f32.mrb[7].mxu1 }
 0xeb5   :  { %2549 = vtanh.f32 %v1201_v47  ;;  %v1924_v52 = vmul.f32 -1.442695, %v1201_v47 }
 0xeb6   :  { %2551 = vpow2.f32 %v1920_v51 }
 0xeb7   :  { %2553 = vpow2.f32 %v1924_v52 }
 0xebb   :  { %v2548_v49 = vpop.eup %2547 }
 0xebc   :  { %1104 = vrot.lane.b32.xlu1 %v2548_v49, %s2638_s14 }
 0xebf   :  { %v2550_v50 = vpop.eup %2549 }
 0xec0   :  { %1213 = vrot.lane.b32.xlu0 %v2550_v50, %s2638_s14  ;;  %v2552_v53 = vpop.eup %2551 }
 0xec1   :  { %v1098_v54 = vadd.f32 1.0, %v2552_v53  ;;  %v2554_v55 = vpop.eup %2553 }
 0xec2   :  { %v1207_v56 = vadd.f32 1.0, %v2554_v55 }
 0xec3   :  { %2555 = vrcp.f32 %v1098_v54 }
 0xec4   :  { %2557 = vrcp.f32 %v1207_v56 }
 0xecd   :  { %v2556_v57 = vpop.eup %2555 }
 0xece   :  { %v2558_v61 = vpop.eup %2557  ;;  %v1102_v1 = vmul.f32 %v2556_v57, %v2964_v21 }
 0xecf   :  { %v1211_v6 = vmul.f32 %v2558_v61, %v2968_v24 }
 0xf2e   :  { %v1105_v58 = vpop.permute.xlu1 %1104 }
 0xf2f   :  { %v1107_v59 = vmul.f32 %v2556_v57, %v1105_v58 }
 0xf31   :  { %1109 = vrot.lane.b32.xlu1 %v1107_v59, %s2639_s15 }
 0xf32   :  { %v1214_v62 = vpop.permute.xlu0 %1213 }
 0xf33   :  { %v1216_v63 = vmul.f32 %v2558_v61, %v1214_v62 }
 0xf35   :  { %1218 = vrot.lane.b32.xlu0 %v1216_v63, %s2639_s15 }
 0xfa3   :  { %v1110_v2 = vpop.permute.xlu1 %1109 }
 0xfa4   :  { %v3012_v3 = vadd.f32 %v1110_v2, %v1102_v1  ;;  %v1933_v2 = vld [vmem:[%s3197_s0 + $0x38] sm:$0xff] }
 0xfa6   :  { %2559 = vtanh.f32 %v3012_v3 }
 0xfa7   :  { %v1219_v8 = vpop.permute.xlu0 %1218 }
 0xfa8   :  { %v3016_v10 = vadd.f32 %v1219_v8, %v1211_v6 }
 0xfaa   :  { %2561 = vtanh.f32 %v3016_v10 }
 0xfb0   :  { %v2560_v12 = vpop.eup %2559 }
 0xfb1   :  { %1115 = vrot.lane.b32.xlu1 %v2560_v12, %s2638_s14 }
 0xfb4   :  { %v2562_v13 = vpop.eup %2561 }
 0xfb5   :  { %1224 = vrot.lane.b32.xlu0 %v2562_v13, %s2638_s14 }
0x1023   :  { %v1116_v14 = vpop.permute.xlu1 %1115 }
0x1024   :  { %v3021_v15 = vmul.f32 %v2556_v57, %v1116_v14 }
0x1026   :  { %1232 = vrot.lane.b32.xlu0 %v3021_v15, %s2638_s14 }
0x1027   :  { %v1225_v16 = vpop.permute.xlu0 %1224 }
0x1028   :  { %v1227_v18 = vmul.f32 %v2558_v61, %v1225_v16 }
0x102a   :  { %1229 = vrot.lane.b32.xlu1 %v1227_v18, %s2639_s15 }
0x102e   :  { %1341 = vrot.lane.b32.xlu1 %v1227_v18, %s2640_s8 }
0x1098   :  { %v1233_v19 = vpop.permute.xlu0 %1232 }
0x109c   :  { %v1230_v20 = vpop.permute.xlu1 %1229 }
0x109d   :  { %v1235_v21 = vsel %vm164_vm4, %v1230_v20, %v1233_v19 }
0x109e   :  { %2259 = vmatmul.mubr.msk.f32.vlgmr.msra.gmra.mrb[8].mxu1 %vm166_vm5, %v1235_v21 }
0x109f   :  { %2453 = vmatpush3.bf16.msra.mxu1 %v2693_v5  ;;  %2303 = vmatprep.mubr.msk.f32.mxu1 %vm2636_vm0, %v2637_v4 }
0x10a0   :  { %v1342_v23 = vpop.permute.xlu1 %1341  ;;  %2454 = vmatprep.subr.bf16.mxu1 %v2635_v0 }
0x10a1   :  { %v1344_v24 = vsel %vm56_vm1, %v1927_v22, %v1342_v23 }
0x10a2   :  { %2272 = vmatmul.mubr.msk.f32.vlgmr.msra.gmra.mrb[14].mxu0 %vm58_vm3, %v1344_v24 }
0x10a3   :  { %2441 = vmatpush3.bf16.msra.mxu0 %v2749_v28  ;;  %2290 = vmatprep.mubr.msk.f32.mxu0 %vm2636_vm0, %v2637_v4 }
0x10a4   :  { %2442 = vmatprep.subr.bf16.mxu0 %v2635_v0  ;;  %2456 = vmatpush3.bf16.msra.mxu1 %v2702_v7 }
0x10a5   :  { %2301 = vmatprep.subr.mxu1 %v2637_v4 }
0x10a7   :  { %2444 = vmatpush3.bf16.msra.mxu0 %v2755_v30 }
0x10a8   :  { %2445 = vmatprep.subr.bf16.mxu0 %v2635_v0  ;;  %2302 = vmatpush3.msk.msra.mxu1 %vm62_vm2, %v2713_v9 }
0x10a9   :  { %2457 = vmatprep.subr.bf16.mxu1 %v2635_v0 }
0x10ab   :  { %2447 = vmatpush3.bf16.msra.mxu0 %v2765_v33 }
0x10ac   :  { %2448 = vmatprep.subr.bf16.mxu0 %v2635_v0 }
0x10af   :  { %2450 = vmatpush3.bf16.msra.mxu0 %v2776_v37 }
0x1171   :  { %v1305_v5 = vpop.f32.mrb[8].mxu1 }
0x1172   :  { %v1306_v7 = vadd.f32 %v2812_v45, %v1305_v5  ;;  %v2260_v25 = vpop.f32.mrb[9].mxu1 }
0x1174   :  { %2563 = vtanh.f32 %v1306_v7  ;;  %v1926_v34 = vmul.f32 -1.442695, %v1306_v7 }
0x1175   :  { %v1414_v26 = vpop.f32.mrb[14].mxu0 }
0x1176   :  { %v1415_v27 = vadd.f32 %v2732_v11, %v1414_v26  ;;  %v2273_v31 = vpop.f32.mrb[15].mxu0 }
0x1178   :  { %2565 = vtanh.f32 %v1415_v27  ;;  %v1930_v35 = vmul.f32 -1.442695, %v1415_v27 }
0x1179   :  { %2567 = vpow2.f32 %v1926_v34 }
0x117a   :  { %2569 = vpow2.f32 %v1930_v35 }
0x117e   :  { %v2564_v32 = vpop.eup %2563 }
0x117f   :  { %1318 = vrot.lane.b32.xlu0 %v2564_v32, %s2638_s14 }
0x1182   :  { %v2566_v9 = vpop.eup %2565 }
0x1183   :  { %1427 = vrot.lane.b32.xlu1 %v2566_v9, %s2638_s14  ;;  %v2568_v36 = vpop.eup %2567 }
0x1184   :  { %v1312_v38 = vadd.f32 1.0, %v2568_v36  ;;  %v2570_v39 = vpop.eup %2569 }
0x1185   :  { %v1421_v40 = vadd.f32 1.0, %v2570_v39 }
0x1186   :  { %2571 = vrcp.f32 %v1312_v38 }
0x1187   :  { %2573 = vrcp.f32 %v1421_v40 }
0x1190   :  { %v2572_v41 = vpop.eup %2571 }
0x1191   :  { %v2574_v44 = vpop.eup %2573  ;;  %v1316_v49 = vmul.f32 %v2572_v41, %v3012_v3 }
0x1192   :  { %v1425_v52 = vmul.f32 %v2574_v44, %v3016_v10 }
0x11f1   :  { %v1319_v42 = vpop.permute.xlu0 %1318 }
0x11f2   :  { %v1321_v43 = vmul.f32 %v2572_v41, %v1319_v42 }
0x11f4   :  { %1323 = vrot.lane.b32.xlu0 %v1321_v43, %s2639_s15 }
0x11f5   :  { %v1428_v47 = vpop.permute.xlu1 %1427 }
0x11f6   :  { %v1430_v48 = vmul.f32 %v2574_v44, %v1428_v47 }
0x11f8   :  { %1432 = vrot.lane.b32.xlu1 %v1430_v48, %s2639_s15 }
0x1266   :  { %v1324_v50 = vpop.permute.xlu0 %1323 }
0x1267   :  { %v3059_v51 = vadd.f32 %v1324_v50, %v1316_v49 }
0x1269   :  { %2575 = vtanh.f32 %v3059_v51 }
0x126a   :  { %v1433_v53 = vpop.permute.xlu1 %1432 }
0x126b   :  { %v3063_v54 = vadd.f32 %v1433_v53, %v1425_v52 }
0x126d   :  { %2577 = vtanh.f32 %v3063_v54 }
0x1273   :  { %v2576_v55 = vpop.eup %2575 }
0x1274   :  { %1329 = vrot.lane.b32.xlu0 %v2576_v55, %s2638_s14 }
0x1277   :  { %v2578_v56 = vpop.eup %2577 }
0x1278   :  { %1438 = vrot.lane.b32.xlu1 %v2578_v56, %s2638_s14 }
0x12e6   :  { %v1330_v57 = vpop.permute.xlu0 %1329 }
0x12e7   :  { %v3068_v58 = vmul.f32 %v2572_v41, %v1330_v57 }
0x12e9   :  { %1446 = vrot.lane.b32.xlu1 %v3068_v58, %s2638_s14 }
0x12ea   :  { %v1439_v59 = vpop.permute.xlu1 %1438 }
0x12eb   :  { %v1441_v61 = vmul.f32 %v2574_v44, %v1439_v59 }
0x12ed   :  { %1443 = vrot.lane.b32.xlu0 %v1441_v61, %s2639_s15 }
0x12f1   :  { %1555 = vrot.lane.b32.xlu0 %v1441_v61, %s2640_s8 }
0x135b   :  { %v1447_v62 = vpop.permute.xlu1 %1446 }
0x135f   :  { %v1444_v63 = vpop.permute.xlu0 %1443 }
0x1360   :  { %v1449_v1 = vsel %vm164_vm4, %v1444_v63, %v1447_v62 }
0x1361   :  { %2291 = vmatmul.mubr.msk.f32.vlgmr.msra.gmra.mrb[16].mxu0 %vm166_vm5, %v1449_v1 }
0x1363   :  { %v1556_v3 = vpop.permute.xlu0 %1555 }
0x1364   :  { %v1558_v6 = vsel %vm56_vm1, %v1933_v2, %v1556_v3 }
0x1365   :  { %2304 = vmatmul.mubr.msk.f32.vlgmr.msra.gmra.mrb[10].mxu1 %vm58_vm3, %v1558_v6  ;;  %v12_v6 = vstv %s3202_s6 }
0x1366   :  { %2459 = vmatpush3.bf16.msra.mxu1 %v2749_v28  ;;  %2322 = vmatprep.mubr.msk.f32.mxu1 %vm2636_vm0, %v2637_v4  ;;  %13 = vst [vmem:[#allocation3] sm:$0x1] %v12_v6 }
0x1367   :  { %2460 = vmatprep.subr.bf16.mxu1 %v2635_v0 }
0x136a   :  { %2462 = vmatpush3.bf16.msra.mxu1 %v2755_v30 }
0x136b   :  { %2463 = vmatprep.subr.bf16.mxu1 %v2635_v0 }
0x136e   :  { %2465 = vmatpush3.bf16.msra.mxu1 %v2765_v33 }
0x136f   :  { %2466 = vmatprep.subr.bf16.mxu1 %v2635_v0 }
0x1372   :  { %2468 = vmatpush3.bf16.msra.mxu1 %v2776_v37 }
0x1434   :  { %v1519_v8 = vpop.f32.mrb[16].mxu0 }
0x1435   :  { %v1520_v10 = vadd.f32 %v2812_v45, %v1519_v8  ;;  %v2292_v12 = vpop.f32.mrb[17].mxu0 }
0x1437   :  { %2579 = vtanh.f32 %v1520_v10  ;;  %v1932_v33 = vmul.f32 -1.442695, %v1520_v10 }
0x1438   :  { %v1628_v28 = vpop.f32.mrb[10].mxu1 }
0x1439   :  { %v1629_v4 = vadd.f32 %v2732_v11, %v1628_v28  ;;  %v2305_v13 = vpop.f32.mrb[11].mxu1 }
0x143b   :  { %2581 = vtanh.f32 %v1629_v4  ;;  %v1936_v0 = vmul.f32 -1.442695, %v1629_v4 }
0x143c   :  { %2583 = vpow2.f32 %v1932_v33  ;;  %v3145_v33 = vld [vmem:[#allocation3] ss:$0 sm:$0xff] }
0x143d   :  { %2585 = vpow2.f32 %v1936_v0 }
0x1441   :  { %v2580_v14 = vpop.eup %2579 }
0x1442   :  { %1532 = vrot.lane.b32.xlu1 %v2580_v14, %s2638_s14 }
0x1445   :  { %v2582_v30 = vpop.eup %2581 }
0x1446   :  { %1641 = vrot.lane.b32.xlu0 %v2582_v30, %s2638_s14  ;;  %v2584_v37 = vpop.eup %2583 }
0x1447   :  { %v1526_v16 = vadd.f32 1.0, %v2584_v37  ;;  %v2586_v18 = vpop.eup %2585 }
0x1448   :  { %v1635_v19 = vadd.f32 1.0, %v2586_v18 }
0x1449   :  { %2587 = vrcp.f32 %v1526_v16 }
0x144a   :  { %2589 = vrcp.f32 %v1635_v19 }
0x1453   :  { %v2588_v20 = vpop.eup %2587 }
0x1454   :  { %v2590_v22 = vpop.eup %2589  ;;  %v1530_v5 = vmul.f32 %v2588_v20, %v3059_v51 }
0x1455   :  { %v1639_v26 = vmul.f32 %v2590_v22, %v3063_v54 }
0x14b4   :  { %v1533_v11 = vpop.permute.xlu1 %1532 }
0x14b5   :  { %v1535_v21 = vmul.f32 %v2588_v20, %v1533_v11 }
0x14b7   :  { %1537 = vrot.lane.b32.xlu1 %v1535_v21, %s2639_s15 }
0x14b8   :  { %v1642_v23 = vpop.permute.xlu0 %1641 }
0x14b9   :  { %v1644_v24 = vmul.f32 %v2590_v22, %v1642_v23 }
0x14bb   :  { %1646 = vrot.lane.b32.xlu0 %v1644_v24, %s2639_s15 }
0x1529   :  { %v1538_v7 = vpop.permute.xlu1 %1537 }
0x152a   :  { %v1540_v25 = vadd.f32 %v1538_v7, %v1530_v5 }
0x152c   :  { %2591 = vtanh.f32 %v1540_v25 }
0x152d   :  { %v1647_v27 = vpop.permute.xlu0 %1646 }
0x152e   :  { %v1649_v31 = vadd.f32 %v1647_v27, %v1639_v26 }
0x1530   :  { %2593 = vtanh.f32 %v1649_v31 }
0x1536   :  { %v2592_v32 = vpop.eup %2591 }
0x1537   :  { %1543 = vrot.lane.b32.xlu1 %v2592_v32, %s2638_s14 }
0x153a   :  { %v2594_v9 = vpop.eup %2593 }
0x153b   :  { %1652 = vrot.lane.b32.xlu0 %v2594_v9, %s2638_s14 }
0x15a9   :  { %v1544_v34 = vpop.permute.xlu1 %1543 }
0x15aa   :  { %v1546_v35 = vmul.f32 %v2588_v20, %v1544_v34 }
0x15ac   :  { %1660 = vrot.lane.b32.xlu0 %v1546_v35, %s2638_s14 }
0x15ad   :  { %v1653_v36 = vpop.permute.xlu0 %1652 }
0x15ae   :  { %v1655_v38 = vmul.f32 %v2590_v22, %v1653_v36 }
0x15b0   :  { %1657 = vrot.lane.b32.xlu1 %v1655_v38, %s2639_s15 }
0x161e   :  { %v1661_v39 = vpop.permute.xlu0 %1660 }
0x1622   :  { %v1658_v40 = vpop.permute.xlu1 %1657 }
0x1623   :  { %v1663_v41 = vsel %vm164_vm4, %v1658_v40, %v1661_v39 }
0x1624   :  { %2323 = vmatmul.mubr.msk.f32.vlgmr.msra.gmra.mrb[12].mxu1 %vm166_vm5, %v1663_v41 }
0x16f7   :  { %v1733_v42 = vpop.f32.mrb[12].mxu1 }
0x16f8   :  { %v1734_v43 = vadd.f32 %v2812_v45, %v1733_v42  ;;  %v2324_v44 = vpop.f32.mrb[13].mxu1 }
0x16fa   :  { %2595 = vtanh.f32 %v1734_v43  ;;  %v1938_v48 = vmul.f32 -1.442695, %v1734_v43 }
0x16fc   :  { %2597 = vpow2.f32 %v1938_v48 }
0x1704   :  { %v2596_v47 = vpop.eup %2595 }
0x1705   :  { %1746 = vrot.lane.b32.xlu1 %v2596_v47, %s2638_s14 }
0x1706   :  { %v2598_v49 = vpop.eup %2597 }
0x1707   :  { %v1740_v50 = vadd.f32 1.0, %v2598_v49 }
0x1709   :  { %2599 = vrcp.f32 %v1740_v50 }
0x1713   :  { %v2600_v51 = vpop.eup %2599 }
0x1714   :  { %v1744_v45 = vmul.f32 %v2600_v51, %v1540_v25 }
0x1777   :  { %v1747_v52 = vpop.permute.xlu1 %1746 }
0x1778   :  { %v1749_v53 = vmul.f32 %v2600_v51, %v1747_v52 }
0x177a   :  { %1751 = vrot.lane.b32.xlu0 %v1749_v53, %s2639_s15 }
0x177e   :  { %265 = vrot.lane.b32.xlu0 %v2829_v17, %s2639_s15  ;;  %v3119_v17 = vld [vmem:[%s3201_s5] ss:$0 sm:$0xff] }
0x1782   :  { %692 = vrot.lane.b32.xlu0 %v2925_v46, %s2639_s15 }
0x1786   :  { %1120 = vrot.lane.b32.xlu0 %v3021_v15, %s2639_s15 }
0x178a   :  { %1548 = vrot.lane.b32.xlu0 %v1546_v35, %s2639_s15 }
0x17ec   :  { %v1752_v54 = vpop.permute.xlu0 %1751 }
0x17ed   :  { %v1754_v55 = vadd.f32 %v1752_v54, %v1744_v45 }
0x17ef   :  { %2601 = vtanh.f32 %v1754_v55 }
0x17f0   :  { %v266_v56 = vpop.permute.xlu0 %265 }
0x17f1   :  { %268 = vst.msk [vmem:[#allocation2] sm:$0xff] %vm164_vm4, %v266_v56 }
0x17f4   :  { %v693_v57 = vpop.permute.xlu0 %692 }
0x17f5   :  { %696 = vst.msk [vmem:[#allocation2 + $0x10] sm:$0xff] %vm164_vm4, %v693_v57 }
0x17f8   :  { %v1121_v46 = vpop.permute.xlu0 %1120  ;;  %v1767_v59 = vld [vmem:[#allocation2] sm:$0xff] }
0x17f9   :  { %v2602_v15 = vpop.eup %2601  ;;  %1124 = vst.msk [vmem:[#allocation2 + $0x20] sm:$0xff] %vm164_vm4, %v1121_v46  ;;  %v1783_v61 = vmul.f32 %v3119_v17, %v1767_v59 }
0x17fa   :  { %1757 = vrot.lane.b32.xlu1 %v2602_v15, %s2638_s14 }
0x17fb   :  { %v1791_v62 = vsel %vm164_vm4, %v1783_v61, 0.0 }
0x17fc   :  { %1792 = vadd.xlane.f32.xlu0 %v1791_v62  ;;  %v1549_v63 = vpop.permute.xlu0 %1548  ;;  %v1769_v1 = vld [vmem:[#allocation2 + $0x10] sm:$0xff] }
0x17fd   :  { %1552 = vst.msk [vmem:[#allocation2 + $0x30] sm:$0xff] %vm164_vm4, %v1549_v63  ;;  %v1785_v2 = vmul.f32 %v3119_v17, %v1769_v1 }
0x17fe   :  { %478 = vrot.lane.b32.xlu1 %v2878_v60, %s2639_s15 }
0x17ff   :  { %v1797_v3 = vsel %vm164_vm4, %v1785_v2, 0.0 }
0x1800   :  { %1798 = vadd.xlane.f32.xlu0 %v1797_v3  ;;  %v1771_v21 = vld [vmem:[#allocation2 + $0x20] sm:$0xff] }
0x1801   :  { %v1787_v24 = vmul.f32 %v3119_v17, %v1771_v21 }
0x1802   :  { %906 = vrot.lane.b32.xlu1 %v2973_v29, %s2639_s15 }
0x1803   :  { %v1803_v7 = vsel %vm164_vm4, %v1787_v24, 0.0 }
0x1804   :  { %v1773_v5 = vld [vmem:[#allocation2 + $0x30] sm:$0xff] }
0x1805   :  { %v1789_v25 = vmul.f32 %v3119_v17, %v1773_v5 }
0x1806   :  { %1334 = vrot.lane.b32.xlu1 %v3068_v58, %s2639_s15 }
0x1807   :  { %v1809_v31 = vsel %vm164_vm4, %v1789_v25, 0.0 }
0x186c   :  { %v1758_v8 = vpop.permute.xlu1 %1757 }
0x186d   :  { %v1760_v10 = vmul.f32 %v2600_v51, %v1758_v8 }
0x186f   :  { %1762 = vrot.lane.b32.xlu1 %v1760_v10, %s2639_s15 }
0x1870   :  { %v479_v12 = vpop.permute.xlu1 %478 }
0x1871   :  { %482 = vst.msk [vmem:[#allocation2 + $0x8] sm:$0xff] %vm164_vm4, %v479_v12 }
0x1874   :  { %v907_v60 = vpop.permute.xlu1 %906 }
0x1875   :  { %910 = vst.msk [vmem:[#allocation2 + $0x18] sm:$0xff] %vm164_vm4, %v907_v60 }
0x1878   :  { %v1335_v28 = vpop.permute.xlu1 %1334  ;;  %v1768_v16 = vld [vmem:[#allocation2 + $0x8] sm:$0xff] }
0x1879   :  { %1338 = vst.msk [vmem:[#allocation2 + $0x28] sm:$0xff] %vm164_vm4, %v1335_v28  ;;  %v1784_v11 = vmul.f32 %v3119_v17, %v1768_v16 }
0x187b   :  { %v1794_v23 = vsel %vm164_vm4, %v1784_v11, 0.0 }
0x187c   :  { %v1770_v4 = vld [vmem:[#allocation2 + $0x18] sm:$0xff] }
0x187d   :  { %v1786_v29 = vmul.f32 %v3119_v17, %v1770_v4 }
0x187f   :  { %v1800_v13 = vsel %vm164_vm4, %v1786_v29, 0.0 }
0x1880   :  { %1801 = vadd.xlane.f32.xlu0 %v1800_v13  ;;  %v1772_v58 = vld [vmem:[#allocation2 + $0x28] sm:$0xff] }
0x1881   :  { %v1788_v14 = vmul.f32 %v3119_v17, %v1772_v58 }
0x1883   :  { %v1806_v30 = vsel %vm164_vm4, %v1788_v14, 0.0 }
0x1884   :  { %1807 = vadd.xlane.f32.xlu0 %v1806_v30 }
0x1889   :  { %v1793_v0 = vpop.xlane.xlu0 %1792 }
0x188a   :  { %v1821_v37 = vadd.f32 %v3145_v33, %v1793_v0 }
0x188c   :  { %v1941_v18 = vmul.f32 -1.442695, %v1821_v37 }
0x188d   :  { %v1799_v19 = vpop.xlane.xlu0 %1798 }
0x188e   :  { %2603 = vpow2.f32 %v1941_v18  ;;  %v1823_v20 = vadd.f32 %v3145_v33, %v1799_v19 }
0x1890   :  { %v1943_v22 = vmul.f32 -1.442695, %v1823_v20 }
0x1892   :  { %2605 = vpow2.f32 %v1943_v22 }
0x1893   :  { %1795 = vadd.xlane.f32.xlu1 %v1794_v23 }
0x1897   :  { %1804 = vadd.xlane.f32.xlu1 %v1803_v7 }
0x1898   :  { %v2604_v26 = vpop.eup %2603 }
0x1899   :  { %v1853_v27 = vadd.f32 1.0, %v2604_v26 }
0x189b   :  { %2607 = vrcp.f32 %v1853_v27  ;;  %1810 = vadd.xlane.f32.xlu1 %v1809_v31 }
0x189c   :  { %v2606_v32 = vpop.eup %2605 }
0x189d   :  { %v1855_v9 = vadd.f32 1.0, %v2606_v32 }
0x189f   :  { %2609 = vrcp.f32 %v1855_v9 }
0x18a5   :  { %v2608_v34 = vpop.eup %2607 }
0x18a6   :  { %1878 = vst.msk [vmem:[%s3203_s7] sm:$0xff] %vm1877_vm6, %v2608_v34 }
0x18a9   :  { %v2610_v35 = vpop.eup %2609 }
0x18aa   :  { %1880 = vst.msk [vmem:[%s3203_s7 + $0x10] sm:$0xff] %vm1877_vm6, %v2610_v35 }
0x18e1   :  { %v1763_v36 = vpop.permute.xlu1 %1762 }
0x18e2   :  { %1766 = vst.msk [vmem:[#allocation2 + $0x38] sm:$0xff] %vm164_vm4, %v1763_v36 }
0x18e9   :  { %v1774_v38 = vld [vmem:[#allocation2 + $0x38] sm:$0xff] }
0x18ea   :  { %v1790_v39 = vmul.f32 %v3119_v17, %v1774_v38 }
0x18ec   :  { %v1812_v40 = vsel %vm164_vm4, %v1790_v39, 0.0 }
0x18ed   :  { %1813 = vadd.xlane.f32.xlu0 %v1812_v40 }
0x190d   :  { %v1802_v41 = vpop.xlane.xlu0 %1801 }
0x190e   :  { %v1824_v42 = vadd.f32 %v3145_v33, %v1802_v41 }
0x1910   :  { %v1944_v43 = vmul.f32 -1.442695, %v1824_v42 }
0x1911   :  { %v1808_v44 = vpop.xlane.xlu0 %1807 }
0x1912   :  { %2611 = vpow2.f32 %v1944_v43  ;;  %v1826_v47 = vadd.f32 %v3145_v33, %v1808_v44 }
0x1914   :  { %v1946_v48 = vmul.f32 -1.442695, %v1826_v47 }
0x1916   :  { %2613 = vpow2.f32 %v1946_v48 }
0x191c   :  { %v2612_v49 = vpop.eup %2611 }
0x191d   :  { %v1856_v50 = vadd.f32 1.0, %v2612_v49 }
0x191f   :  { %2615 = vrcp.f32 %v1856_v50 }
0x1920   :  { %v2614_v51 = vpop.eup %2613  ;;  %v1796_v52 = vpop.xlane.xlu1 %1795 }
0x1921   :  { %v1858_v53 = vadd.f32 1.0, %v2614_v51  ;;  %v1822_v45 = vadd.f32 %v3145_v33, %v1796_v52 }
0x1923   :  { %2617 = vrcp.f32 %v1858_v53  ;;  %v1942_v54 = vmul.f32 -1.442695, %v1822_v45 }
0x1924   :  { %v1805_v55 = vpop.xlane.xlu1 %1804 }
0x1925   :  { %2619 = vpow2.f32 %v1942_v54  ;;  %v1825_v56 = vadd.f32 %v3145_v33, %v1805_v55 }
0x1927   :  { %v1945_v57 = vmul.f32 -1.442695, %v1825_v56 }
0x1928   :  { %v1811_v17 = vpop.xlane.xlu1 %1810 }
0x1929   :  { %v2616_v46 = vpop.eup %2615  ;;  %2621 = vpow2.f32 %v1945_v57  ;;  %v1827_v59 = vadd.f32 %v3145_v33, %v1811_v17 }
0x192a   :  { %1881 = vst.msk [vmem:[%s3203_s7 + $0x18] sm:$0xff] %vm1877_vm6, %v2616_v46 }
0x192b   :  { %v1947_v15 = vmul.f32 -1.442695, %v1827_v59 }
0x192d   :  { %v2618_v61 = vpop.eup %2617  ;;  %2623 = vpow2.f32 %v1947_v15 }
0x192e   :  { %1883 = vst.msk [vmem:[%s3203_s7 + $0x28] sm:$0xff] %vm1877_vm6, %v2618_v61 }
0x192f   :  { %v2620_v62 = vpop.eup %2619 }
0x1930   :  { %v1854_v63 = vadd.f32 1.0, %v2620_v62 }
0x1932   :  { %2625 = vrcp.f32 %v1854_v63 }
0x1933   :  { %v2622_v1 = vpop.eup %2621 }
0x1934   :  { %v1857_v2 = vadd.f32 1.0, %v2622_v1 }
0x1936   :  { %2627 = vrcp.f32 %v1857_v2 }
0x1937   :  { %v2624_v3 = vpop.eup %2623 }
0x1938   :  { %v1859_v6 = vadd.f32 1.0, %v2624_v3 }
0x193a   :  { %2629 = vrcp.f32 %v1859_v6 }
0x193c   :  { %v2626_v8 = vpop.eup %2625 }
0x193d   :  { %1879 = vst.msk [vmem:[%s3203_s7 + $0x8] sm:$0xff] %vm1877_vm6, %v2626_v8 }
0x1940   :  { %v2628_v10 = vpop.eup %2627 }
0x1941   :  { %1882 = vst.msk [vmem:[%s3203_s7 + $0x20] sm:$0xff] %vm1877_vm6, %v2628_v10 }
0x1944   :  { %v2630_v12 = vpop.eup %2629 }
0x1945   :  { %1884 = vst.msk [vmem:[%s3203_s7 + $0x30] sm:$0xff] %vm1877_vm6, %v2630_v12 }
0x197a   :  { %v1814_v60 = vpop.xlane.xlu0 %1813 }
0x197b   :  { %v1828_v28 = vadd.f32 %v3145_v33, %v1814_v60 }
0x197d   :  { %v1948_v4 = vmul.f32 -1.442695, %v1828_v28 }
0x197f   :  { %2631 = vpow2.f32 %v1948_v4 }
0x1989   :  { %v2632_v29 = vpop.eup %2631 }
0x198a   :  { %v1860_v13 = vadd.f32 1.0, %v2632_v29 }
0x198c   :  { %2633 = vrcp.f32 %v1860_v13 }
0x1996   :  { %v2634_v58 = vpop.eup %2633 }
0x1997   :  { %1885 = vst.msk [vmem:[%s3203_s7 + $0x38] sm:$0xff] %vm1877_vm6, %v2634_v58 }

</bundles_post_ra>
